<compile_context>
chip_gen: v7x
topology: tpu7x:2x2x1
jax: 0.10.0
libtpu: 0.0.40
codegen_flags: <defaults>
</compile_context>

<pallas_src>
import math
import functools

import jax
import jax.numpy as jnp
from jax.experimental import pallas as pl
from jax.experimental.pallas import tpu as pltpu


def _vmem_limit_bytes():
    # ~75% of physical VMEM, capped at 112 MiB: ~96 MiB on v5e/v6e (128 MiB
    # physical), ~48 MiB on v7x (64 MiB physical).  Leaves headroom for the
    # compiler's own scratch while letting streamed weights double-buffer.
    try:
        cap = pltpu.get_tpu_info().vmem_capacity_bytes
    except Exception:
        cap = 64 * 1024 * 1024
    return int(min(0.75 * cap, 112 * 1024 * 1024))


def _erf(x):
    # Abramowitz & Stegun 7.1.26 polynomial approximation of erf
    # (max abs err ~1.5e-7); exp and the approximate reciprocal use the EUP
    # slot, keeping the VALU slots free for the surrounding polynomial.
    # TODO(synk): exact erf replaced by a polynomial approximation.
    a1, a2, a3, a4, a5 = (0.254829592, -0.284496736, 1.421413741,
                          -1.453152027, 1.061405429)
    p = 0.3275911
    sgn = jnp.where(x < 0.0, -1.0, 1.0)
    ax = jnp.abs(x)
    t = pl.reciprocal(1.0 + p * ax, approx=True)
    poly = ((((a5 * t + a4) * t + a3) * t + a2) * t + a1) * t
    return sgn * (1.0 - poly * jnp.exp(-ax * ax))


def _gelu_exact(x):
    # F.gelu(x, approximate='none') -- the PyTorch default for activation='gelu'
    return 0.5 * x * (1.0 + _erf(x * (1.0 / math.sqrt(2.0))))


def _layernorm(x, g, b, eps=1e-5):
    mu = jnp.mean(x, axis=-1, keepdims=True)
    var = jnp.mean((x - mu) ** 2, axis=-1, keepdims=True)
    return (x - mu) * jax.lax.rsqrt(var + eps) * g + b


def _bf16(x):
    return x.astype(jnp.bfloat16)


def encoder_layer_kernel(x_ref,
                         ln1g_ref, ln1b_ref, wqkv_ref, bqkv_ref,
                         wo_ref, bo_ref,
                         ln2g_ref, ln2b_ref, w1_ref, b1_ref, w2_ref, b2_ref,
                         o_ref, acc_ref, *, nhead):
    l = pl.program_id(1)                      # layer index (arbitrary axis)
    bt, seq, d = acc_ref.shape                # batch-tile, seq, d_model
    m = bt * seq
    hd = d // nhead

    # ---- residual-stream carry -----------------------------------------------
    # acc_ref is an f32 VMEM scratch that persists across the layer axis; the
    # pre-rotated embedding is consumed only at l == 0 and the bf16 hidden
    # state is written back to HBM only at the last layer step.
    @pl.when(l == 0)
    def _():
        acc_ref[...] = x_ref[...]

    x = acc_ref[...]                          # (bt, seq, d) f32

    # ---- self-attention block (norm_first) ------------------------------------
    xn = _layernorm(x, ln1g_ref[0], ln1b_ref[0])
    qkv = jnp.dot(_bf16(xn.reshape(m, d)), wqkv_ref[0],
                  preferred_element_type=jnp.float32) + bqkv_ref[0]   # (m, 3d)

    # Per-head attention with the out-projection accumulated per head: the
    # lane concatenation of head contexts is replaced by sublane-indexed row
    # blocks of Wo, and every contraction stays a 2-D or single-batch-dim
    # matmul (the forms Mosaic lowers natively).  1/sqrt(hd) is folded into Wq.
    wo_full = wo_ref[0]                                               # (d, d)
    attn = jnp.zeros((m, d), jnp.float32)
    for h in range(nhead):
        q_h = qkv[:, h * hd:(h + 1) * hd].reshape(bt, seq, hd)
        k_h = qkv[:, d + h * hd:d + (h + 1) * hd].reshape(bt, seq, hd)
        v_h = qkv[:, 2 * d + h * hd:2 * d + (h + 1) * hd].reshape(bt, seq, hd)
        s = jnp.einsum('bqd,bkd->bqk', _bf16(q_h), _bf16(k_h),
                       preferred_element_type=jnp.float32)            # (bt,s,s)
        s = s - jnp.max(s, axis=-1, keepdims=True)
        p = jnp.exp(s)
        p = p / jnp.sum(p, axis=-1, keepdims=True)
        ctx = jnp.einsum('bqk,bkd->bqd', _bf16(p), _bf16(v_h),
                         preferred_element_type=jnp.float32)          # (bt,s,hd)
        attn = attn + jnp.dot(_bf16(ctx.reshape(m, hd)),
                              wo_full[h * hd:(h + 1) * hd, :],
                              preferred_element_type=jnp.float32)     # (m, d)
    x = x + (attn + bo_ref[0]).reshape(bt, seq, d)

    # ---- feed-forward block ----------------------------------------------------
    xn2 = _layernorm(x, ln2g_ref[0], ln2b_ref[0])
    h1 = jnp.dot(_bf16(xn2.reshape(m, d)), w1_ref[0],
                 preferred_element_type=jnp.float32) + b1_ref[0]      # (m, 4d)
    h1 = _gelu_exact(h1)
    h2 = jnp.dot(_bf16(h1), w2_ref[0],
                 preferred_element_type=jnp.float32) + b2_ref[0]      # (m, d)
    x = x + h2.reshape(bt, seq, d)

    acc_ref[...] = x                          # carry to the next layer step

    @pl.when(l == pl.num_programs(1) - 1)
    def _():
        o_ref[...] = x.astype(o_ref.dtype)    # bf16 hidden written once


def fc_out_kernel(h_ref, w_ref, b_ref, o_ref):
    bt, seq, d = h_ref.shape
    tv = w_ref.shape[1]
    logits = jnp.dot(h_ref[...].reshape(bt * seq, d), w_ref[...],
                     preferred_element_type=jnp.float32) + b_ref[...]
    o_ref[...] = logits.reshape(bt, seq, tv)


def init_params(key, vocab_size, d_model, nhead, num_layers, max_len=64):
    D, H = d_model, nhead
    Dh = D // H
    std = 0.02
    scale = 1.0 / math.sqrt(Dh)
    ks = jax.random.split(key, 2 + num_layers)

    emb = jax.random.normal(ks[0], (vocab_size, D), jnp.float32) * std
    wout = jax.random.normal(ks[1], (vocab_size, D), jnp.float32) * std  # fc_out.weight
    bout = jnp.zeros((1, vocab_size), jnp.float32)

    wqkv, bqkv, wo, bo = [], [], [], []
    ln1g, ln1b, ln2g, ln2b = [], [], [], []
    w1, b1, w2, b2 = [], [], [], []
    for l in range(num_layers):
        lk = jax.random.split(ks[2 + l], 8)
        in_proj_w = jax.random.normal(lk[0], (3 * D, D), jnp.float32) * std
        in_proj_b = jax.random.normal(lk[1], (3 * D,), jnp.float32) * std
        out_proj_w = jax.random.normal(lk[2], (D, D), jnp.float32) * std
        out_proj_b = jax.random.normal(lk[3], (D,), jnp.float32) * std
        lin1_w = jax.random.normal(lk[4], (4 * D, D), jnp.float32) * std
        lin1_b = jax.random.normal(lk[5], (4 * D,), jnp.float32) * std
        lin2_w = jax.random.normal(lk[6], (D, 4 * D), jnp.float32) * std
        lin2_b = jax.random.normal(lk[7], (D,), jnp.float32) * std

        # Fold the 1/sqrt(head_dim) attention scale into the Q projection.
        w_in = in_proj_w.at[0:D].multiply(scale)
        b_in = in_proj_b.at[0:D].multiply(scale)

        wqkv.append(w_in.T)                        # (D, 3D): x @ wqkv == x @ W_in.T
        bqkv.append(b_in.reshape(1, 3 * D))
        wo.append(out_proj_w.T)                    # (D, D): rows = head-dim inputs
        bo.append(out_proj_b.reshape(1, D))
        ln1g.append(jnp.ones((1, D), jnp.float32))
        ln1b.append(jnp.zeros((1, D), jnp.float32))
        ln2g.append(jnp.ones((1, D), jnp.float32))
        ln2b.append(jnp.zeros((1, D), jnp.float32))
        w1.append(lin1_w.T)                        # (D, 4D)
        b1.append(lin1_b.reshape(1, 4 * D))
        w2.append(lin2_w.T)                        # (4D, D)
        b2.append(lin2_b.reshape(1, D))

    stack = lambda xs: jnp.stack(xs, axis=0)
    pos = jnp.arange(max_len, dtype=jnp.float32)[:, None]
    div = jnp.exp(jnp.arange(0, D, 2, dtype=jnp.float32) *
                  (-math.log(10000.0) / D))
    return dict(
        emb=emb, sin=jnp.sin(pos * div), cos=jnp.cos(pos * div),
        wout=wout.T.astype(jnp.bfloat16),          # (D, V) bf16
        bout=bout,
        ln1g=stack(ln1g), ln1b=stack(ln1b), ln2g=stack(ln2g), ln2b=stack(ln2b),
        wqkv=stack(wqkv).astype(jnp.bfloat16), bqkv=stack(bqkv),
        wo=stack(wo).astype(jnp.bfloat16), bo=stack(bo),
        w1=stack(w1).astype(jnp.bfloat16), b1=stack(b1),
        w2=stack(w2).astype(jnp.bfloat16), b2=stack(b2))


def _pick_batch_tile(batch, seq, max_rows=1024):
    # Fold as many batch rows as reasonable into one grid step: big M per step
    # feeds the MXU with full-height tiles, amortizes the ~0.35 us per-step
    # overhead and minimizes how often the per-layer weights are restreamed.
    for cand in range(batch, 0, -1):
        if batch % cand == 0 and cand * seq <= max_rows:
            return cand
    return 1


def _pick_vocab_tile(vocab, cap=4096):
    # Lane-dense, MXU-native N tiles (multiples of 256) that divide the vocab;
    # small vocabularies use a single tile.
    if vocab <= cap:
        return vocab
    for tv in range(cap, 255, -256):
        if vocab % tv == 0:
            return tv
    for tv in range(cap, 127, -128):
        if vocab % tv == 0:
            return tv
    return 2048   # ragged last tile handled by pl.cdiv on the grid


def decoder_only_transformer(src, params, *, nhead, num_layers):
    vocab, d = params["emb"].shape
    batch, seq = src.shape
    vmem_limit = _vmem_limit_bytes()

    # Glue (plain JAX): embedding gather, sqrt(d_model) scale and the rotary
    # positional encoding (exactly the PyTorch module: rotate de-interleaved
    # even/odd halves and concatenate them).  These fuse into one cheap XLA op
    # chain; everything else runs inside the kernels.
    emb = jnp.take(params["emb"], src, axis=0) * math.sqrt(d)     # (B, S, D)
    x1 = emb[..., 0::2]
    x2 = emb[..., 1::2]
    cos = params["cos"][:seq]
    sin = params["sin"][:seq]
    x = jnp.concatenate([x1 * cos - x2 * sin, x1 * sin + x2 * cos], axis=-1)

    bt = _pick_batch_tile(batch, seq)
    n_bt = batch // bt

    layer_args = (x,
                  params["ln1g"], params["ln1b"],
                  params["wqkv"], params["bqkv"], params["wo"], params["bo"],
                  params["ln2g"], params["ln2b"],
                  params["w1"], params["b1"], params["w2"], params["b2"])

    def per_layer_spec(arr):
        tail = arr.ndim - 1
        return pl.BlockSpec((1,) + arr.shape[1:],
                            lambda b, l, _t=tail: (l,) + (0,) * _t)

    in_specs = ([pl.BlockSpec((bt, seq, d), lambda b, l: (b, 0, 0))]
                + [per_layer_spec(a) for a in layer_args[1:]])

    hidden = pl.pallas_call(
        functools.partial(encoder_layer_kernel, nhead=nhead),
        out_shape=jax.ShapeDtypeStruct((batch, seq, d), jnp.bfloat16),
        grid=(n_bt, num_layers),
        in_specs=in_specs,
        out_specs=pl.BlockSpec((bt, seq, d), lambda b, l: (b, 0, 0)),
        scratch_shapes=[pltpu.VMEM((bt, seq, d), jnp.float32)],
        compiler_params=pltpu.CompilerParams(
            dimension_semantics=("parallel", "arbitrary"),
            vmem_limit_bytes=vmem_limit),
    )(*layer_args)

    # ---- fc_out projection, tiled over the vocab dimension --------------------
    tv = _pick_vocab_tile(vocab)
    n_vt = pl.cdiv(vocab, tv)

    logits = pl.pallas_call(
        fc_out_kernel,
        out_shape=jax.ShapeDtypeStruct((batch, seq, vocab), jnp.float32),
        grid=(n_bt, n_vt),
        in_specs=[pl.BlockSpec((bt, seq, d), lambda b, v: (b, 0, 0)),
                  pl.BlockSpec((d, tv), lambda b, v: (0, v)),
                  pl.BlockSpec((1, tv), lambda b, v: (0, v))],
        out_specs=pl.BlockSpec((bt, seq, tv), lambda b, v: (b, 0, v)),
        compiler_params=pltpu.CompilerParams(
            dimension_semantics=("parallel", "parallel"),
            vmem_limit_bytes=vmem_limit),
    )(hidden, params["wout"], params["bout"])

    return logits


if __name__ == "__main__":
    vocab_size, d_model, nhead, num_layers = 64, 32, 4, 2
    B, S = 2, 8

    key = jax.random.PRNGKey(0)
    pkey, skey = jax.random.split(key)
    params = init_params(pkey, vocab_size, d_model, nhead, num_layers,
                         max_len=64)
    src = jax.random.randint(skey, (B, S), 0, vocab_size, dtype=jnp.int32)

    out = decoder_only_transformer(src, params, nhead=nhead,
                                   num_layers=num_layers)
    out = jax.block_until_ready(out)
    assert out.shape == (B, S, vocab_size), out.shape
    assert bool(jnp.all(jnp.isfinite(out)))
    print("KERNEL_OK")
</pallas_src>

<mosaic_0001>
module attributes {stable_mosaic.version = 11 : i64} {
  func.func @encoder_layer_kernel(%arg0: i32, %arg1: i32, %arg2: memref<2x8x32xf32, #tpu.memory_space<vmem>>, %arg3: memref<1x1x32xf32, #tpu.memory_space<vmem>>, %arg4: memref<1x1x32xf32, #tpu.memory_space<vmem>>, %arg5: memref<1x32x96xbf16, #tpu.memory_space<vmem>>, %arg6: memref<1x1x96xf32, #tpu.memory_space<vmem>>, %arg7: memref<1x32x32xbf16, #tpu.memory_space<vmem>>, %arg8: memref<1x1x32xf32, #tpu.memory_space<vmem>>, %arg9: memref<1x1x32xf32, #tpu.memory_space<vmem>>, %arg10: memref<1x1x32xf32, #tpu.memory_space<vmem>>, %arg11: memref<1x32x128xbf16, #tpu.memory_space<vmem>>, %arg12: memref<1x1x128xf32, #tpu.memory_space<vmem>>, %arg13: memref<1x128x32xbf16, #tpu.memory_space<vmem>>, %arg14: memref<1x1x32xf32, #tpu.memory_space<vmem>>, %arg15: memref<2x8x32xbf16, #tpu.memory_space<vmem>>, %arg16: memref<2x8x32xf32, #tpu.memory_space<vmem>>) attributes {dimension_semantics = [#tpu.dimension_semantics<parallel>, #tpu.dimension_semantics<arbitrary>], iteration_bounds = array<i64: 1, 2>, scalar_prefetch = 0 : i64, scratch_operands = 1 : i64, tpu.core_type = #tpu.core_type<tc>, window_params = [{transform_indices = @transform_0, window_bounds = array<i64: 2, 8, 32>}, {transform_indices = @transform_1, window_bounds = array<i64: 1, 1, 32>}, {transform_indices = @transform_2, window_bounds = array<i64: 1, 1, 32>}, {transform_indices = @transform_3, window_bounds = array<i64: 1, 32, 96>}, {transform_indices = @transform_4, window_bounds = array<i64: 1, 1, 96>}, {transform_indices = @transform_5, window_bounds = array<i64: 1, 32, 32>}, {transform_indices = @transform_6, window_bounds = array<i64: 1, 1, 32>}, {transform_indices = @transform_7, window_bounds = array<i64: 1, 1, 32>}, {transform_indices = @transform_8, window_bounds = array<i64: 1, 1, 32>}, {transform_indices = @transform_9, window_bounds = array<i64: 1, 32, 128>}, {transform_indices = @transform_10, window_bounds = array<i64: 1, 1, 128>}, {transform_indices = @transform_11, window_bounds = array<i64: 1, 128, 32>}, {transform_indices = @transform_12, window_bounds = array<i64: 1, 1, 32>}, {transform_indices = @transform_13, window_bounds = array<i64: 2, 8, 32>}]} {
    %c0_i32 = arith.constant 0 : i32
    %0 = arith.cmpi eq, %arg1, %c0_i32 : i32
    %1 = arith.extui %0 : i1 to i32
    %c0_i32_0 = arith.constant 0 : i32
    %2 = arith.cmpi ne, %1, %c0_i32_0 : i32
    scf.if %2 {
      %c0_91 = arith.constant 0 : index
      %c0_92 = arith.constant 0 : index
      %c0_93 = arith.constant 0 : index
      %245 = vector.load %arg2[%c0_91, %c0_92, %c0_93] : memref<2x8x32xf32, #tpu.memory_space<vmem>>, vector<2x8x32xf32>
      %c0_94 = arith.constant 0 : index
      %c0_95 = arith.constant 0 : index
      %c0_96 = arith.constant 0 : index
      %246 = vector.load %arg16[%c0_94, %c0_95, %c0_96] : memref<2x8x32xf32, #tpu.memory_space<vmem>>, vector<2x8x32xf32>
      tpu.vector_store %arg16[%c0_94, %c0_95, %c0_96], %245 {strides = array<i32>} : memref<2x8x32xf32, #tpu.memory_space<vmem>>, vector<2x8x32xf32>,
    } else {
    }
    %c0 = arith.constant 0 : index
    %c0_1 = arith.constant 0 : index
    %c0_2 = arith.constant 0 : index
    %3 = vector.load %arg16[%c0, %c0_1, %c0_2] : memref<2x8x32xf32, #tpu.memory_space<vmem>>, vector<2x8x32xf32>
    %c0_3 = arith.constant 0 : index
    %c0_4 = arith.constant 0 : index
    %c0_5 = arith.constant 0 : index
    %4 = vector.load %arg3[%c0_3, %c0_4, %c0_5] : memref<1x1x32xf32, #tpu.memory_space<vmem>>, vector<1x1x32xf32>
    %5 = vector.shape_cast %4 : vector<1x1x32xf32> to vector<1x32xf32>
    %c0_6 = arith.constant 0 : index
    %c0_7 = arith.constant 0 : index
    %c0_8 = arith.constant 0 : index
    %6 = vector.load %arg4[%c0_6, %c0_7, %c0_8] : memref<1x1x32xf32, #tpu.memory_space<vmem>>, vector<1x1x32xf32>
    %7 = vector.shape_cast %6 : vector<1x1x32xf32> to vector<1x32xf32>
    %cst = arith.constant dense<0.000000e+00> : vector<2x8xf32>
    %8 = vector.multi_reduction <add>, %3, %cst [2] : vector<2x8x32xf32> to vector<2x8xf32>
    %9 = vector.shape_cast %8 : vector<2x8xf32> to vector<2x8x1xf32>
    %cst_9 = arith.constant 3.200000e+01 : f32
    %10 = vector.broadcast %cst_9 : f32 to vector<2x8x1xf32>
    %11 = arith.divf %9, %10 : vector<2x8x1xf32>
    %12 = vector.broadcast %11 : vector<2x8x1xf32> to vector<2x8x32xf32>
    %13 = arith.subf %3, %12 : vector<2x8x32xf32>
    %14 = arith.mulf %13, %13 : vector<2x8x32xf32>
    %cst_10 = arith.constant dense<0.000000e+00> : vector<2x8xf32>
    %15 = vector.multi_reduction <add>, %14, %cst_10 [2] : vector<2x8x32xf32> to vector<2x8xf32>
    %16 = vector.shape_cast %15 : vector<2x8xf32> to vector<2x8x1xf32>
    %cst_11 = arith.constant 3.200000e+01 : f32
    %17 = vector.broadcast %cst_11 : f32 to vector<2x8x1xf32>
    %18 = arith.divf %16, %17 : vector<2x8x1xf32>
    %19 = vector.broadcast %11 : vector<2x8x1xf32> to vector<2x8x32xf32>
    %20 = arith.subf %3, %19 : vector<2x8x32xf32>
    %cst_12 = arith.constant 9.99999974E-6 : f32
    %21 = vector.broadcast %cst_12 : f32 to vector<2x8x1xf32>
    %22 = arith.addf %18, %21 : vector<2x8x1xf32>
    %23 = math.rsqrt %22 : vector<2x8x1xf32>
    %24 = vector.broadcast %23 : vector<2x8x1xf32> to vector<2x8x32xf32>
    %25 = arith.mulf %20, %24 : vector<2x8x32xf32>
    %26 = vector.shape_cast %5 : vector<1x32xf32> to vector<1x1x32xf32>
    %27 = vector.broadcast %26 : vector<1x1x32xf32> to vector<2x8x32xf32>
    %28 = arith.mulf %25, %27 : vector<2x8x32xf32>
    %29 = vector.shape_cast %7 : vector<1x32xf32> to vector<1x1x32xf32>
    %30 = vector.broadcast %29 : vector<1x1x32xf32> to vector<2x8x32xf32>
    %31 = arith.addf %28, %30 : vector<2x8x32xf32>
    %32 = vector.shape_cast %31 : vector<2x8x32xf32> to vector<16x32xf32>
    %33 = arith.truncf %32 : vector<16x32xf32> to vector<16x32xbf16>
    %c0_13 = arith.constant 0 : index
    %c0_14 = arith.constant 0 : index
    %c0_15 = arith.constant 0 : index
    %34 = vector.load %arg5[%c0_13, %c0_14, %c0_15] : memref<1x32x96xbf16, #tpu.memory_space<vmem>>, vector<1x32x96xbf16>
    %35 = vector.shape_cast %34 : vector<1x32x96xbf16> to vector<32x96xbf16>
    %cst_16 = arith.constant dense<0.000000e+00> : vector<16x96xf32>
    %36 = tpu.matmul %33, %35, %cst_16 {dimension_numbers = #tpu.dot_dimension_numbers<[1], [0], [0], [1], [0, 0, 1, 1], [], []>} : vector<16x32xbf16>, vector<32x96xbf16>, vector<16x96xf32> -> vector<16x96xf32>
    %c0_17 = arith.constant 0 : index
    %c0_18 = arith.constant 0 : index
    %c0_19 = arith.constant 0 : index
    %37 = vector.load %arg6[%c0_17, %c0_18, %c0_19] : memref<1x1x96xf32, #tpu.memory_space<vmem>>, vector<1x1x96xf32>
    %38 = vector.shape_cast %37 : vector<1x1x96xf32> to vector<1x96xf32>
    %39 = vector.broadcast %38 : vector<1x96xf32> to vector<16x96xf32>
    %40 = arith.addf %36, %39 : vector<16x96xf32>
    %c0_20 = arith.constant 0 : index
    %c0_21 = arith.constant 0 : index
    %c0_22 = arith.constant 0 : index
    %41 = vector.load %arg7[%c0_20, %c0_21, %c0_22] : memref<1x32x32xbf16, #tpu.memory_space<vmem>>, vector<1x32x32xbf16>
    %42 = vector.shape_cast %41 : vector<1x32x32xbf16> to vector<32x32xbf16>
    %cst_23 = arith.constant 0.000000e+00 : f32
    %43 = vector.broadcast %cst_23 : f32 to vector<16x32xf32>
    %44 = vector.extract_strided_slice %40 {offsets = [0, 0], sizes = [16, 8], strides = [1, 1]} : vector<16x96xf32> to vector<16x8xf32>
    %45 = vector.shape_cast %44 : vector<16x8xf32> to vector<2x8x8xf32>
    %46 = vector.extract_strided_slice %40 {offsets = [0, 32], sizes = [16, 8], strides = [1, 1]} : vector<16x96xf32> to vector<16x8xf32>
    %47 = vector.shape_cast %46 : vector<16x8xf32> to vector<2x8x8xf32>
    %48 = vector.extract_strided_slice %40 {offsets = [0, 64], sizes = [16, 8], strides = [1, 1]} : vector<16x96xf32> to vector<16x8xf32>
    %49 = vector.shape_cast %48 : vector<16x8xf32> to vector<2x8x8xf32>
    %50 = arith.truncf %45 : vector<2x8x8xf32> to vector<2x8x8xbf16>
    %51 = arith.truncf %47 : vector<2x8x8xf32> to vector<2x8x8xbf16>
    "tpu.trace_start"() <{level = 10 : i32, message = "bqd,bkd->bqk"}> : () -> ()
    %cst_24 = arith.constant dense<0.000000e+00> : vector<2x8x8xf32>
    %52 = tpu.matmul %50, %51, %cst_24 {dimension_numbers = #tpu.dot_dimension_numbers<[2], [2], [1], [1], [0, 0, 0, 1, 1, 1], [0], [0]>} : vector<2x8x8xbf16>, vector<2x8x8xbf16>, vector<2x8x8xf32> -> vector<2x8x8xf32>
    "tpu.trace_stop"() : () -> ()
    %cst_25 = arith.constant dense<0xFF800000> : vector<2x8xf32>
    %53 = vector.multi_reduction <maximumf>, %52, %cst_25 [2] : vector<2x8x8xf32> to vector<2x8xf32>
    %54 = vector.shape_cast %53 : vector<2x8xf32> to vector<2x8x1xf32>
    %55 = vector.broadcast %54 : vector<2x8x1xf32> to vector<2x8x8xf32>
    %56 = arith.subf %52, %55 : vector<2x8x8xf32>
    %57 = math.exp %56 : vector<2x8x8xf32>
    %cst_26 = arith.constant dense<0.000000e+00> : vector<2x8xf32>
    %58 = vector.multi_reduction <add>, %57, %cst_26 [2] : vector<2x8x8xf32> to vector<2x8xf32>
    %59 = vector.shape_cast %58 : vector<2x8xf32> to vector<2x8x1xf32>
    %60 = vector.broadcast %59 : vector<2x8x1xf32> to vector<2x8x8xf32>
    %61 = arith.divf %57, %60 : vector<2x8x8xf32>
    %62 = arith.truncf %61 : vector<2x8x8xf32> to vector<2x8x8xbf16>
    %63 = arith.truncf %49 : vector<2x8x8xf32> to vector<2x8x8xbf16>
    "tpu.trace_start"() <{level = 10 : i32, message = "bqk,bkd->bqd"}> : () -> ()
    %cst_27 = arith.constant dense<0.000000e+00> : vector<2x8x8xf32>
    %64 = tpu.matmul %62, %63, %cst_27 {dimension_numbers = #tpu.dot_dimension_numbers<[2], [1], [1], [2], [0, 0, 0, 1, 1, 2], [0], [0]>} : vector<2x8x8xbf16>, vector<2x8x8xbf16>, vector<2x8x8xf32> -> vector<2x8x8xf32>
    "tpu.trace_stop"() : () -> ()
    %65 = vector.shape_cast %64 : vector<2x8x8xf32> to vector<16x8xf32>
    %66 = arith.truncf %65 : vector<16x8xf32> to vector<16x8xbf16>
    %67 = vector.extract_strided_slice %42 {offsets = [0, 0], sizes = [8, 32], strides = [1, 1]} : vector<32x32xbf16> to vector<8x32xbf16>
    %cst_28 = arith.constant dense<0.000000e+00> : vector<16x32xf32>
    %68 = tpu.matmul %66, %67, %cst_28 {dimension_numbers = #tpu.dot_dimension_numbers<[1], [0], [0], [1], [0, 0, 1, 1], [], []>} : vector<16x8xbf16>, vector<8x32xbf16>, vector<16x32xf32> -> vector<16x32xf32>
    %69 = arith.addf %43, %68 : vector<16x32xf32>
    %70 = vector.extract_strided_slice %40 {offsets = [0, 8], sizes = [16, 8], strides = [1, 1]} : vector<16x96xf32> to vector<16x8xf32>
    %71 = vector.shape_cast %70 : vector<16x8xf32> to vector<2x8x8xf32>
    %72 = vector.extract_strided_slice %40 {offsets = [0, 40], sizes = [16, 8], strides = [1, 1]} : vector<16x96xf32> to vector<16x8xf32>
    %73 = vector.shape_cast %72 : vector<16x8xf32> to vector<2x8x8xf32>
    %74 = vector.extract_strided_slice %40 {offsets = [0, 72], sizes = [16, 8], strides = [1, 1]} : vector<16x96xf32> to vector<16x8xf32>
    %75 = vector.shape_cast %74 : vector<16x8xf32> to vector<2x8x8xf32>
    %76 = arith.truncf %71 : vector<2x8x8xf32> to vector<2x8x8xbf16>
    %77 = arith.truncf %73 : vector<2x8x8xf32> to vector<2x8x8xbf16>
    "tpu.trace_start"() <{level = 10 : i32, message = "bqd,bkd->bqk"}> : () -> ()
    %cst_29 = arith.constant dense<0.000000e+00> : vector<2x8x8xf32>
    %78 = tpu.matmul %76, %77, %cst_29 {dimension_numbers = #tpu.dot_dimension_numbers<[2], [2], [1], [1], [0, 0, 0, 1, 1, 1], [0], [0]>} : vector<2x8x8xbf16>, vector<2x8x8xbf16>, vector<2x8x8xf32> -> vector<2x8x8xf32>
    "tpu.trace_stop"() : () -> ()
    %cst_30 = arith.constant dense<0xFF800000> : vector<2x8xf32>
    %79 = vector.multi_reduction <maximumf>, %78, %cst_30 [2] : vector<2x8x8xf32> to vector<2x8xf32>
    %80 = vector.shape_cast %79 : vector<2x8xf32> to vector<2x8x1xf32>
    %81 = vector.broadcast %80 : vector<2x8x1xf32> to vector<2x8x8xf32>
    %82 = arith.subf %78, %81 : vector<2x8x8xf32>
    %83 = math.exp %82 : vector<2x8x8xf32>
    %cst_31 = arith.constant dense<0.000000e+00> : vector<2x8xf32>
    %84 = vector.multi_reduction <add>, %83, %cst_31 [2] : vector<2x8x8xf32> to vector<2x8xf32>
    %85 = vector.shape_cast %84 : vector<2x8xf32> to vector<2x8x1xf32>
    %86 = vector.broadcast %85 : vector<2x8x1xf32> to vector<2x8x8xf32>
    %87 = arith.divf %83, %86 : vector<2x8x8xf32>
    %88 = arith.truncf %87 : vector<2x8x8xf32> to vector<2x8x8xbf16>
    %89 = arith.truncf %75 : vector<2x8x8xf32> to vector<2x8x8xbf16>
    "tpu.trace_start"() <{level = 10 : i32, message = "bqk,bkd->bqd"}> : () -> ()
    %cst_32 = arith.constant dense<0.000000e+00> : vector<2x8x8xf32>
    %90 = tpu.matmul %88, %89, %cst_32 {dimension_numbers = #tpu.dot_dimension_numbers<[2], [1], [1], [2], [0, 0, 0, 1, 1, 2], [0], [0]>} : vector<2x8x8xbf16>, vector<2x8x8xbf16>, vector<2x8x8xf32> -> vector<2x8x8xf32>
    "tpu.trace_stop"() : () -> ()
    %91 = vector.shape_cast %90 : vector<2x8x8xf32> to vector<16x8xf32>
    %92 = arith.truncf %91 : vector<16x8xf32> to vector<16x8xbf16>
    %93 = vector.extract_strided_slice %42 {offsets = [8, 0], sizes = [8, 32], strides = [1, 1]} : vector<32x32xbf16> to vector<8x32xbf16>
    %cst_33 = arith.constant dense<0.000000e+00> : vector<16x32xf32>
    %94 = tpu.matmul %92, %93, %cst_33 {dimension_numbers = #tpu.dot_dimension_numbers<[1], [0], [0], [1], [0, 0, 1, 1], [], []>} : vector<16x8xbf16>, vector<8x32xbf16>, vector<16x32xf32> -> vector<16x32xf32>
    %95 = arith.addf %69, %94 : vector<16x32xf32>
    %96 = vector.extract_strided_slice %40 {offsets = [0, 16], sizes = [16, 8], strides = [1, 1]} : vector<16x96xf32> to vector<16x8xf32>
    %97 = vector.shape_cast %96 : vector<16x8xf32> to vector<2x8x8xf32>
    %98 = vector.extract_strided_slice %40 {offsets = [0, 48], sizes = [16, 8], strides = [1, 1]} : vector<16x96xf32> to vector<16x8xf32>
    %99 = vector.shape_cast %98 : vector<16x8xf32> to vector<2x8x8xf32>
    %100 = vector.extract_strided_slice %40 {offsets = [0, 80], sizes = [16, 8], strides = [1, 1]} : vector<16x96xf32> to vector<16x8xf32>
    %101 = vector.shape_cast %100 : vector<16x8xf32> to vector<2x8x8xf32>
    %102 = arith.truncf %97 : vector<2x8x8xf32> to vector<2x8x8xbf16>
    %103 = arith.truncf %99 : vector<2x8x8xf32> to vector<2x8x8xbf16>
    "tpu.trace_start"() <{level = 10 : i32, message = "bqd,bkd->bqk"}> : () -> ()
    %cst_34 = arith.constant dense<0.000000e+00> : vector<2x8x8xf32>
    %104 = tpu.matmul %102, %103, %cst_34 {dimension_numbers = #tpu.dot_dimension_numbers<[2], [2], [1], [1], [0, 0, 0, 1, 1, 1], [0], [0]>} : vector<2x8x8xbf16>, vector<2x8x8xbf16>, vector<2x8x8xf32> -> vector<2x8x8xf32>
    "tpu.trace_stop"() : () -> ()
    %cst_35 = arith.constant dense<0xFF800000> : vector<2x8xf32>
    %105 = vector.multi_reduction <maximumf>, %104, %cst_35 [2] : vector<2x8x8xf32> to vector<2x8xf32>
    %106 = vector.shape_cast %105 : vector<2x8xf32> to vector<2x8x1xf32>
    %107 = vector.broadcast %106 : vector<2x8x1xf32> to vector<2x8x8xf32>
    %108 = arith.subf %104, %107 : vector<2x8x8xf32>
    %109 = math.exp %108 : vector<2x8x8xf32>
    %cst_36 = arith.constant dense<0.000000e+00> : vector<2x8xf32>
    %110 = vector.multi_reduction <add>, %109, %cst_36 [2] : vector<2x8x8xf32> to vector<2x8xf32>
    %111 = vector.shape_cast %110 : vector<2x8xf32> to vector<2x8x1xf32>
    %112 = vector.broadcast %111 : vector<2x8x1xf32> to vector<2x8x8xf32>
    %113 = arith.divf %109, %112 : vector<2x8x8xf32>
    %114 = arith.truncf %113 : vector<2x8x8xf32> to vector<2x8x8xbf16>
    %115 = arith.truncf %101 : vector<2x8x8xf32> to vector<2x8x8xbf16>
    "tpu.trace_start"() <{level = 10 : i32, message = "bqk,bkd->bqd"}> : () -> ()
    %cst_37 = arith.constant dense<0.000000e+00> : vector<2x8x8xf32>
    %116 = tpu.matmul %114, %115, %cst_37 {dimension_numbers = #tpu.dot_dimension_numbers<[2], [1], [1], [2], [0, 0, 0, 1, 1, 2], [0], [0]>} : vector<2x8x8xbf16>, vector<2x8x8xbf16>, vector<2x8x8xf32> -> vector<2x8x8xf32>
    "tpu.trace_stop"() : () -> ()
    %117 = vector.shape_cast %116 : vector<2x8x8xf32> to vector<16x8xf32>
    %118 = arith.truncf %117 : vector<16x8xf32> to vector<16x8xbf16>
    %119 = vector.extract_strided_slice %42 {offsets = [16, 0], sizes = [8, 32], strides = [1, 1]} : vector<32x32xbf16> to vector<8x32xbf16>
    %cst_38 = arith.constant dense<0.000000e+00> : vector<16x32xf32>
    %120 = tpu.matmul %118, %119, %cst_38 {dimension_numbers = #tpu.dot_dimension_numbers<[1], [0], [0], [1], [0, 0, 1, 1], [], []>} : vector<16x8xbf16>, vector<8x32xbf16>, vector<16x32xf32> -> vector<16x32xf32>
    %121 = arith.addf %95, %120 : vector<16x32xf32>
    %122 = vector.extract_strided_slice %40 {offsets = [0, 24], sizes = [16, 8], strides = [1, 1]} : vector<16x96xf32> to vector<16x8xf32>
    %123 = vector.shape_cast %122 : vector<16x8xf32> to vector<2x8x8xf32>
    %124 = vector.extract_strided_slice %40 {offsets = [0, 56], sizes = [16, 8], strides = [1, 1]} : vector<16x96xf32> to vector<16x8xf32>
    %125 = vector.shape_cast %124 : vector<16x8xf32> to vector<2x8x8xf32>
    %126 = vector.extract_strided_slice %40 {offsets = [0, 88], sizes = [16, 8], strides = [1, 1]} : vector<16x96xf32> to vector<16x8xf32>
    %127 = vector.shape_cast %126 : vector<16x8xf32> to vector<2x8x8xf32>
    %128 = arith.truncf %123 : vector<2x8x8xf32> to vector<2x8x8xbf16>
    %129 = arith.truncf %125 : vector<2x8x8xf32> to vector<2x8x8xbf16>
    "tpu.trace_start"() <{level = 10 : i32, message = "bqd,bkd->bqk"}> : () -> ()
    %cst_39 = arith.constant dense<0.000000e+00> : vector<2x8x8xf32>
    %130 = tpu.matmul %128, %129, %cst_39 {dimension_numbers = #tpu.dot_dimension_numbers<[2], [2], [1], [1], [0, 0, 0, 1, 1, 1], [0], [0]>} : vector<2x8x8xbf16>, vector<2x8x8xbf16>, vector<2x8x8xf32> -> vector<2x8x8xf32>
    "tpu.trace_stop"() : () -> ()
    %cst_40 = arith.constant dense<0xFF800000> : vector<2x8xf32>
    %131 = vector.multi_reduction <maximumf>, %130, %cst_40 [2] : vector<2x8x8xf32> to vector<2x8xf32>
    %132 = vector.shape_cast %131 : vector<2x8xf32> to vector<2x8x1xf32>
    %133 = vector.broadcast %132 : vector<2x8x1xf32> to vector<2x8x8xf32>
    %134 = arith.subf %130, %133 : vector<2x8x8xf32>
    %135 = math.exp %134 : vector<2x8x8xf32>
    %cst_41 = arith.constant dense<0.000000e+00> : vector<2x8xf32>
    %136 = vector.multi_reduction <add>, %135, %cst_41 [2] : vector<2x8x8xf32> to vector<2x8xf32>
    %137 = vector.shape_cast %136 : vector<2x8xf32> to vector<2x8x1xf32>
    %138 = vector.broadcast %137 : vector<2x8x1xf32> to vector<2x8x8xf32>
    %139 = arith.divf %135, %138 : vector<2x8x8xf32>
    %140 = arith.truncf %139 : vector<2x8x8xf32> to vector<2x8x8xbf16>
    %141 = arith.truncf %127 : vector<2x8x8xf32> to vector<2x8x8xbf16>
    "tpu.trace_start"() <{level = 10 : i32, message = "bqk,bkd->bqd"}> : () -> ()
    %cst_42 = arith.constant dense<0.000000e+00> : vector<2x8x8xf32>
    %142 = tpu.matmul %140, %141, %cst_42 {dimension_numbers = #tpu.dot_dimension_numbers<[2], [1], [1], [2], [0, 0, 0, 1, 1, 2], [0], [0]>} : vector<2x8x8xbf16>, vector<2x8x8xbf16>, vector<2x8x8xf32> -> vector<2x8x8xf32>
    "tpu.trace_stop"() : () -> ()
    %143 = vector.shape_cast %142 : vector<2x8x8xf32> to vector<16x8xf32>
    %144 = arith.truncf %143 : vector<16x8xf32> to vector<16x8xbf16>
    %145 = vector.extract_strided_slice %42 {offsets = [24, 0], sizes = [8, 32], strides = [1, 1]} : vector<32x32xbf16> to vector<8x32xbf16>
    %cst_43 = arith.constant dense<0.000000e+00> : vector<16x32xf32>
    %146 = tpu.matmul %144, %145, %cst_43 {dimension_numbers = #tpu.dot_dimension_numbers<[1], [0], [0], [1], [0, 0, 1, 1], [], []>} : vector<16x8xbf16>, vector<8x32xbf16>, vector<16x32xf32> -> vector<16x32xf32>
    %147 = arith.addf %121, %146 : vector<16x32xf32>
    %c0_44 = arith.constant 0 : index
    %c0_45 = arith.constant 0 : index
    %c0_46 = arith.constant 0 : index
    %148 = vector.load %arg8[%c0_44, %c0_45, %c0_46] : memref<1x1x32xf32, #tpu.memory_space<vmem>>, vector<1x1x32xf32>
    %149 = vector.shape_cast %148 : vector<1x1x32xf32> to vector<1x32xf32>
    %150 = vector.broadcast %149 : vector<1x32xf32> to vector<16x32xf32>
    %151 = arith.addf %147, %150 : vector<16x32xf32>
    %152 = vector.shape_cast %151 : vector<16x32xf32> to vector<2x8x32xf32>
    %153 = arith.addf %3, %152 : vector<2x8x32xf32>
    %c0_47 = arith.constant 0 : index
    %c0_48 = arith.constant 0 : index
    %c0_49 = arith.constant 0 : index
    %154 = vector.load %arg9[%c0_47, %c0_48, %c0_49] : memref<1x1x32xf32, #tpu.memory_space<vmem>>, vector<1x1x32xf32>
    %155 = vector.shape_cast %154 : vector<1x1x32xf32> to vector<1x32xf32>
    %c0_50 = arith.constant 0 : index
    %c0_51 = arith.constant 0 : index
    %c0_52 = arith.constant 0 : index
    %156 = vector.load %arg10[%c0_50, %c0_51, %c0_52] : memref<1x1x32xf32, #tpu.memory_space<vmem>>, vector<1x1x32xf32>
    %157 = vector.shape_cast %156 : vector<1x1x32xf32> to vector<1x32xf32>
    %cst_53 = arith.constant dense<0.000000e+00> : vector<2x8xf32>
    %158 = vector.multi_reduction <add>, %153, %cst_53 [2] : vector<2x8x32xf32> to vector<2x8xf32>
    %159 = vector.shape_cast %158 : vector<2x8xf32> to vector<2x8x1xf32>
    %cst_54 = arith.constant 3.200000e+01 : f32
    %160 = vector.broadcast %cst_54 : f32 to vector<2x8x1xf32>
    %161 = arith.divf %159, %160 : vector<2x8x1xf32>
    %162 = vector.broadcast %161 : vector<2x8x1xf32> to vector<2x8x32xf32>
    %163 = arith.subf %153, %162 : vector<2x8x32xf32>
    %164 = arith.mulf %163, %163 : vector<2x8x32xf32>
    %cst_55 = arith.constant dense<0.000000e+00> : vector<2x8xf32>
    %165 = vector.multi_reduction <add>, %164, %cst_55 [2] : vector<2x8x32xf32> to vector<2x8xf32>
    %166 = vector.shape_cast %165 : vector<2x8xf32> to vector<2x8x1xf32>
    %cst_56 = arith.constant 3.200000e+01 : f32
    %167 = vector.broadcast %cst_56 : f32 to vector<2x8x1xf32>
    %168 = arith.divf %166, %167 : vector<2x8x1xf32>
    %169 = vector.broadcast %161 : vector<2x8x1xf32> to vector<2x8x32xf32>
    %170 = arith.subf %153, %169 : vector<2x8x32xf32>
    %cst_57 = arith.constant 9.99999974E-6 : f32
    %171 = vector.broadcast %cst_57 : f32 to vector<2x8x1xf32>
    %172 = arith.addf %168, %171 : vector<2x8x1xf32>
    %173 = math.rsqrt %172 : vector<2x8x1xf32>
    %174 = vector.broadcast %173 : vector<2x8x1xf32> to vector<2x8x32xf32>
    %175 = arith.mulf %170, %174 : vector<2x8x32xf32>
    %176 = vector.shape_cast %155 : vector<1x32xf32> to vector<1x1x32xf32>
    %177 = vector.broadcast %176 : vector<1x1x32xf32> to vector<2x8x32xf32>
    %178 = arith.mulf %175, %177 : vector<2x8x32xf32>
    %179 = vector.shape_cast %157 : vector<1x32xf32> to vector<1x1x32xf32>
    %180 = vector.broadcast %179 : vector<1x1x32xf32> to vector<2x8x32xf32>
    %181 = arith.addf %178, %180 : vector<2x8x32xf32>
    %182 = vector.shape_cast %181 : vector<2x8x32xf32> to vector<16x32xf32>
    %183 = arith.truncf %182 : vector<16x32xf32> to vector<16x32xbf16>
    %c0_58 = arith.constant 0 : index
    %c0_59 = arith.constant 0 : index
    %c0_60 = arith.constant 0 : index
    %184 = vector.load %arg11[%c0_58, %c0_59, %c0_60] : memref<1x32x128xbf16, #tpu.memory_space<vmem>>, vector<1x32x128xbf16>
    %185 = vector.shape_cast %184 : vector<1x32x128xbf16> to vector<32x128xbf16>
    %cst_61 = arith.constant dense<0.000000e+00> : vector<16x128xf32>
    %186 = tpu.matmul %183, %185, %cst_61 {dimension_numbers = #tpu.dot_dimension_numbers<[1], [0], [0], [1], [0, 0, 1, 1], [], []>} : vector<16x32xbf16>, vector<32x128xbf16>, vector<16x128xf32> -> vector<16x128xf32>
    %c0_62 = arith.constant 0 : index
    %c0_63 = arith.constant 0 : index
    %c0_64 = arith.constant 0 : index
    %187 = vector.load %arg12[%c0_62, %c0_63, %c0_64] : memref<1x1x128xf32, #tpu.memory_space<vmem>>, vector<1x1x128xf32>
    %188 = vector.shape_cast %187 : vector<1x1x128xf32> to vector<1x128xf32>
    %189 = vector.broadcast %188 : vector<1x128xf32> to vector<16x128xf32>
    %190 = arith.addf %186, %189 : vector<16x128xf32>
    %cst_65 = arith.constant 5.000000e-01 : f32
    %191 = vector.broadcast %cst_65 : f32 to vector<16x128xf32>
    %192 = arith.mulf %191, %190 : vector<16x128xf32>
    %cst_66 = arith.constant 0.707106769 : f32
    %193 = vector.broadcast %cst_66 : f32 to vector<16x128xf32>
    %194 = arith.mulf %190, %193 : vector<16x128xf32>
    %cst_67 = arith.constant 0.000000e+00 : f32
    %195 = vector.broadcast %cst_67 : f32 to vector<16x128xf32>
    %196 = arith.cmpf olt, %194, %195 : vector<16x128xf32>
    %cst_68 = arith.constant -1.000000e+00 : f32
    %cst_69 = arith.constant 1.000000e+00 : f32
    %197 = vector.broadcast %cst_68 : f32 to vector<16x128xf32>
    %198 = vector.broadcast %cst_69 : f32 to vector<16x128xf32>
    %199 = arith.select %196, %197, %198 : vector<16x128xi1>, vector<16x128xf32>
    %200 = math.absf %194 : vector<16x128xf32>
    %cst_70 = arith.constant 0.327591091 : f32
    %201 = vector.broadcast %cst_70 : f32 to vector<16x128xf32>
    %202 = arith.mulf %201, %200 : vector<16x128xf32>
    %cst_71 = arith.constant 1.000000e+00 : f32
    %203 = vector.broadcast %cst_71 : f32 to vector<16x128xf32>
    %204 = arith.addf %203, %202 : vector<16x128xf32>
    %205 = tpu.reciprocal %204 {approx = true} : vector<16x128xf32> -> vector<16x128xf32>
    %cst_72 = arith.constant 1.06140542 : f32
    %206 = vector.broadcast %cst_72 : f32 to vector<16x128xf32>
    %207 = arith.mulf %206, %205 : vector<16x128xf32>
    %cst_73 = arith.constant -1.45315206 : f32
    %208 = vector.broadcast %cst_73 : f32 to vector<16x128xf32>
    %209 = arith.addf %207, %208 : vector<16x128xf32>
    %210 = arith.mulf %209, %205 : vector<16x128xf32>
    %cst_74 = arith.constant 1.42141378 : f32
    %211 = vector.broadcast %cst_74 : f32 to vector<16x128xf32>
    %212 = arith.addf %210, %211 : vector<16x128xf32>
    %213 = arith.mulf %212, %205 : vector<16x128xf32>
    %cst_75 = arith.constant -0.284496725 : f32
    %214 = vector.broadcast %cst_75 : f32 to vector<16x128xf32>
    %215 = arith.addf %213, %214 : vector<16x128xf32>
    %216 = arith.mulf %215, %205 : vector<16x128xf32>
    %cst_76 = arith.constant 0.254829586 : f32
    %217 = vector.broadcast %cst_76 : f32 to vector<16x128xf32>
    %218 = arith.addf %216, %217 : vector<16x128xf32>
    %219 = arith.mulf %218, %205 : vector<16x128xf32>
    %cst_77 = arith.constant 0.000000e+00 : f32
    %220 = vector.broadcast %cst_77 : f32 to vector<16x128xf32>
    %221 = arith.subf %220, %200 : vector<16x128xf32>
    %222 = arith.mulf %221, %200 : vector<16x128xf32>
    %223 = math.exp %222 : vector<16x128xf32>
    %224 = arith.mulf %219, %223 : vector<16x128xf32>
    %cst_78 = arith.constant 1.000000e+00 : f32
    %225 = vector.broadcast %cst_78 : f32 to vector<16x128xf32>
    %226 = arith.subf %225, %224 : vector<16x128xf32>
    %227 = arith.mulf %199, %226 : vector<16x128xf32>
    %cst_79 = arith.constant 1.000000e+00 : f32
    %228 = vector.broadcast %cst_79 : f32 to vector<16x128xf32>
    %229 = arith.addf %228, %227 : vector<16x128xf32>
    %230 = arith.mulf %192, %229 : vector<16x128xf32>
    %231 = arith.truncf %230 : vector<16x128xf32> to vector<16x128xbf16>
    %c0_80 = arith.constant 0 : index
    %c0_81 = arith.constant 0 : index
    %c0_82 = arith.constant 0 : index
    %232 = vector.load %arg13[%c0_80, %c0_81, %c0_82] : memref<1x128x32xbf16, #tpu.memory_space<vmem>>, vector<1x128x32xbf16>
    %233 = vector.shape_cast %232 : vector<1x128x32xbf16> to vector<128x32xbf16>
    %cst_83 = arith.constant dense<0.000000e+00> : vector<16x32xf32>
    %234 = tpu.matmul %231, %233, %cst_83 {dimension_numbers = #tpu.dot_dimension_numbers<[1], [0], [0], [1], [0, 0, 1, 1], [], []>} : vector<16x128xbf16>, vector<128x32xbf16>, vector<16x32xf32> -> vector<16x32xf32>
    %c0_84 = arith.constant 0 : index
    %c0_85 = arith.constant 0 : index
    %c0_86 = arith.constant 0 : index
    %235 = vector.load %arg14[%c0_84, %c0_85, %c0_86] : memref<1x1x32xf32, #tpu.memory_space<vmem>>, vector<1x1x32xf32>
    %236 = vector.shape_cast %235 : vector<1x1x32xf32> to vector<1x32xf32>
    %237 = vector.broadcast %236 : vector<1x32xf32> to vector<16x32xf32>
    %238 = arith.addf %234, %237 : vector<16x32xf32>
    %239 = vector.shape_cast %238 : vector<16x32xf32> to vector<2x8x32xf32>
    %240 = arith.addf %153, %239 : vector<2x8x32xf32>
    %c0_87 = arith.constant 0 : index
    %c0_88 = arith.constant 0 : index
    %c0_89 = arith.constant 0 : index
    %241 = vector.load %arg16[%c0_87, %c0_88, %c0_89] : memref<2x8x32xf32, #tpu.memory_space<vmem>>, vector<2x8x32xf32>
    tpu.vector_store %arg16[%c0_87, %c0_88, %c0_89], %240 {strides = array<i32>} : memref<2x8x32xf32, #tpu.memory_space<vmem>>, vector<2x8x32xf32>,
    %c1_i32 = arith.constant 1 : i32
    %242 = arith.cmpi eq, %arg1, %c1_i32 : i32
    %243 = arith.extui %242 : i1 to i32
    %c0_i32_90 = arith.constant 0 : i32
    %244 = arith.cmpi ne, %243, %c0_i32_90 : i32
    scf.if %244 {
      %245 = arith.truncf %240 : vector<2x8x32xf32> to vector<2x8x32xbf16>
      %c0_91 = arith.constant 0 : index
      %c0_92 = arith.constant 0 : index
      %c0_93 = arith.constant 0 : index
      %246 = vector.load %arg15[%c0_91, %c0_92, %c0_93] : memref<2x8x32xbf16, #tpu.memory_space<vmem>>, vector<2x8x32xbf16>
      tpu.vector_store %arg15[%c0_91, %c0_92, %c0_93], %245 {strides = array<i32>} : memref<2x8x32xbf16, #tpu.memory_space<vmem>>, vector<2x8x32xbf16>,
    } else {
    }
    return
  }
  func.func @transform_0(%arg0: i32, %arg1: i32) -> (i32, i32, i32) {
    %c0_i32 = arith.constant 0 : i32
    %c0_i32_0 = arith.constant 0 : i32
    %c0_i32_1 = arith.constant 0 : i32
    return %arg0, %c0_i32, %c0_i32_0 : i32, i32, i32
  }
  func.func @transform_1(%arg0: i32, %arg1: i32) -> (i32, i32, i32) {
    %c0_i32 = arith.constant 0 : i32
    %c0_i32_0 = arith.constant 0 : i32
    %c0_i32_1 = arith.constant 0 : i32
    return %arg1, %c0_i32, %c0_i32_0 : i32, i32, i32
  }
  func.func @transform_2(%arg0: i32, %arg1: i32) -> (i32, i32, i32) {
    %c0_i32 = arith.constant 0 : i32
    %c0_i32_0 = arith.constant 0 : i32
    %c0_i32_1 = arith.constant 0 : i32
    return %arg1, %c0_i32, %c0_i32_0 : i32, i32, i32
  }
  func.func @transform_3(%arg0: i32, %arg1: i32) -> (i32, i32, i32) {
    %c0_i32 = arith.constant 0 : i32
    %c0_i32_0 = arith.constant 0 : i32
    %c0_i32_1 = arith.constant 0 : i32
    return %arg1, %c0_i32, %c0_i32_0 : i32, i32, i32
  }
  func.func @transform_4(%arg0: i32, %arg1: i32) -> (i32, i32, i32) {
    %c0_i32 = arith.constant 0 : i32
    %c0_i32_0 = arith.constant 0 : i32
    %c0_i32_1 = arith.constant 0 : i32
    return %arg1, %c0_i32, %c0_i32_0 : i32, i32, i32
  }
  func.func @transform_5(%arg0: i32, %arg1: i32) -> (i32, i32, i32) {
    %c0_i32 = arith.constant 0 : i32
    %c0_i32_0 = arith.constant 0 : i32
    %c0_i32_1 = arith.constant 0 : i32
    return %arg1, %c0_i32, %c0_i32_0 : i32, i32, i32
  }
  func.func @transform_6(%arg0: i32, %arg1: i32) -> (i32, i32, i32) {
    %c0_i32 = arith.constant 0 : i32
    %c0_i32_0 = arith.constant 0 : i32
    %c0_i32_1 = arith.constant 0 : i32
    return %arg1, %c0_i32, %c0_i32_0 : i32, i32, i32
  }
  func.func @transform_7(%arg0: i32, %arg1: i32) -> (i32, i32, i32) {
    %c0_i32 = arith.constant 0 : i32
    %c0_i32_0 = arith.constant 0 : i32
    %c0_i32_1 = arith.constant 0 : i32
    return %arg1, %c0_i32, %c0_i32_0 : i32, i32, i32
  }
  func.func @transform_8(%arg0: i32, %arg1: i32) -> (i32, i32, i32) {
    %c0_i32 = arith.constant 0 : i32
    %c0_i32_0 = arith.constant 0 : i32
    %c0_i32_1 = arith.constant 0 : i32
    return %arg1, %c0_i32, %c0_i32_0 : i32, i32, i32
  }
  func.func @transform_9(%arg0: i32, %arg1: i32) -> (i32, i32, i32) {
    %c0_i32 = arith.constant 0 : i32
    %c0_i32_0 = arith.constant 0 : i32
    %c0_i32_1 = arith.constant 0 : i32
    return %arg1, %c0_i32, %c0_i32_0 : i32, i32, i32
  }
  func.func @transform_10(%arg0: i32, %arg1: i32) -> (i32, i32, i32) {
    %c0_i32 = arith.constant 0 : i32
    %c0_i32_0 = arith.constant 0 : i32
    %c0_i32_1 = arith.constant 0 : i32
    return %arg1, %c0_i32, %c0_i32_0 : i32, i32, i32
  }
  func.func @transform_11(%arg0: i32, %arg1: i32) -> (i32, i32, i32) {
    %c0_i32 = arith.constant 0 : i32
    %c0_i32_0 = arith.constant 0 : i32
    %c0_i32_1 = arith.constant 0 : i32
    return %arg1, %c0_i32, %c0_i32_0 : i32, i32, i32
  }
  func.func @transform_12(%arg0: i32, %arg1: i32) -> (i32, i32, i32) {
    %c0_i32 = arith.constant 0 : i32
    %c0_i32_0 = arith.constant 0 : i32
    %c0_i32_1 = arith.constant 0 : i32
    return %arg1, %c0_i32, %c0_i32_0 : i32, i32, i32
  }
  func.func @transform_13(%arg0: i32, %arg1: i32) -> (i32, i32, i32) {
    %c0_i32 = arith.constant 0 : i32
    %c0_i32_0 = arith.constant 0 : i32
    %c0_i32_1 = arith.constant 0 : i32
    return %arg0, %c0_i32, %c0_i32_0 : i32, i32, i32
  }
}

</mosaic_0001>

<bundles_post_ra>
// kernel: tpu_custom_call.1
= control target key start
LH: loop header
LB: loop body
LE: loop exit
PB: predicated region body
PF: predicated region fallthrough
CT: control target
= control target key end

     0   :  { %s3252_s0 = inlined_call_operand.vmem [shape: f32[2,8,32], index: 0, kind: input, shape index: {}]   ;;  %s3253_s1 = inlined_call_operand.vmem [shape: f32[2,1,32], index: 1, kind: input, shape index: {}]   ;;  %s3254_s2 = inlined_call_operand.vmem [shape: f32[2,1,32], index: 2, kind: input, shape index: {}]   ;;  %s3255_s3 = inlined_call_operand.vmem [shape: bf16[2,32,96], index: 3, kind: input, shape index: {}]   ;;  %s3256_s4 = inlined_call_operand.vmem [shape: f32[2,1,96], index: 4, kind: input, shape index: {}]   ;;  %s3257_s5 = inlined_call_operand.vmem [shape: bf16[2,32,32], index: 5, kind: input, shape index: {}]   ;;  %s3258_s6 = inlined_call_operand.vmem [shape: f32[2,1,32], index: 6, kind: input, shape index: {}]   ;;  %s3259_s7 = inlined_call_operand.vmem [shape: f32[2,1,32], index: 7, kind: input, shape index: {}]   ;;  %s3260_s8 = inlined_call_operand.vmem [shape: f32[2,1,32], index: 8, kind: input, shape index: {}]   ;;  %s3261_s9 = inlined_call_operand.vmem [shape: bf16[2,32,128], index: 9, kind: input, shape index: {}]   ;;  %s3262_s10 = inlined_call_operand.vmem [shape: f32[2,1,128], index: 10, kind: input, shape index: {}]   ;;  %s3263_s11 = inlined_call_operand.vmem [shape: bf16[2,128,32], index: 11, kind: input, shape index: {}]   ;;  %s3264_s12 = inlined_call_operand.vmem [shape: f32[2,1,32], index: 12, kind: input, shape index: {}]   ;;  %s3265_s13 = inlined_call_operand.hbm [shape: bf16[2,8,32], index: 13, kind: output, shape index: {}]  }
   0x1   :  { %3270 = sst [smem:[#allocation10_spill]] %s3255_s3 }
   0x2   :  { %3271 = sst [smem:[#allocation11_spill]] %s3257_s5 }
   0x3   :  { %3272 = sst [smem:[#allocation12_spill]] %s3265_s13 }
   0x4   :  { %18 = vsyncpa [#allocation4], 0  ;;  %s2855_s25 = smov 0   ;;  %s2857_s26 = smov 0  }
   0x5   :  { %s2859_s27 = smov 0  }
   0x6 LB: > { %3273 = sst [smem:[#allocation6_spill]] %s2763_s26  ;;  %s33_s29 = sadd.s32 1, %s2763_s26  ;;  %s2767_s27 = sphi %s2859_s27, %s24_s27   ;;  %s2763_s26 = sphi %s2857_s26, %s3290_s26   ;;  %s2759_s25 = sphi %s2855_s25, %s3289_s25  }
   0x7   : > { %3274 = sst [smem:[#allocation7_spill]] %s2767_s27  ;;  %p34_p0 = scmp.ge.s32.totalorder %s33_s29, 2 }
   0x8   : > { %p2337_p1 = scmp.ge.s32.totalorder %s2767_s27, 1  ;;  %p505_p2 = scmp.lt.s32.totalorder %s2767_s27, 3 }
   0x9   : > { %s3292_s29 = smov (%p34_p0, %s33_s29), 0 }
   0xa   : > { %3275 = sst [smem:[#allocation8_spill]] %s3292_s29  ;;  %p506_p3 = pnand %p2337_p1, %p505_p2 }
   0xc   : > { %509 = sbr.rel (%p506_p3) target bundleno = 4532 (0x11b4), region = 72 }
  0x13   : > { %p594_p4 = scmp.lt.s32.totalorder %s2759_s25, 1  ;;  %s3276_s3 = sld [smem:[#allocation10_spill]] }
  0x14   : > { %s3277_s5 = sld [smem:[#allocation11_spill]]  ;;  %p2346_p5 = scmp.ne.s32.totalorder %s2759_s25, 0 }
  0x15   : > { %s2878_s30 = scalar_select %p594_p4, %s2759_s25, 1 }
  0x16   : > { %643 = sbr.rel (%p2346_p5) target bundleno = 29 (0x1d), region = 76  ;;  %v644_v0 = vld [vmem:[%s3252_s0] sm:$0xff] (!%p2346_p5)  ;;  %vm646_vm0 = vcmask (!%p2346_p5), 261120   ;;  %v645_v1 = vld [vmem:[%s3252_s0 + $0x8] sm:$0xff] (!%p2346_p5) }
  0x17   : > { %s2394_s20 = sshll.u32 %s2878_s30, 4  ;;  %s618_s27 = scalar_lea.vmem %s3259_s7, %s2878_s30  ;;  %647 = vst.msk [vmem:[#allocation2] sm:$0xff] (!%p2346_p5), %vm646_vm0, %v644_v0  ;;  %648 = vst.msk [vmem:[#allocation2 + $0x8] sm:$0xff] (!%p2346_p5), %vm646_vm0, %v645_v1 }
  0x18   : > { %s621_s23 = scalar_lea.vmem %s3260_s8, %s2878_s30  ;;  %s637_s21 = scalar_lea.vmem %s3264_s12, %s2878_s30 }
  0x19   : > { %s2896_s15 = scalar_lea.vmem %s3276_s3, %s2394_s20  ;;  %s2918_s3 = scalar_lea.vmem %s3261_s9, %s2394_s20 }
  0x1a   : > { %s2901_s26 = scalar_lea.vmem %s3277_s5, %s2394_s20  ;;  %s629_s5 = scalar_lea.vmem %s3262_s10, %s2878_s30 }
  0x1b   : > { %3278 = sst [smem:[#allocation9_spill]] %s2901_s26  ;;  %s2397_s26 = sshll.u32 %s2878_s30, 6 }
  0x1c   : > { %s2928_s17 = scalar_lea.vmem %s3263_s11, %s2397_s26 }
  0x1d PF: > { %vm653_vm1 = vcmask 261120   ;;  %v2655_v16 = vld [vmem:[%s2896_s15] sm:$0xff]   ;;  %v2769_v17 = vmov 0.0   ;;  %v2656_v18 = vld [vmem:[%s2896_s15 + $0x8] sm:$0xff]   ;;  %vm2770_vm2 = vmmov 0   ;;  %s3279_s28 = scalar_lea.vmem %s3253_s1, %s2878_s30  ;;  %s3280_s16 = scalar_lea.vmem %s3254_s2, %s2878_s30  ;;  %vm774_vm3 = vcmask 64512  }
  0x1e   : > { %v2941_v2 = vld [vmem:[#allocation2] sm:$0xff]  ;;  %v2943_v3 = vld [vmem:[#allocation2 + $0x8] sm:$0xff]  ;;  %2453 = vmatprep.subr.bf16.mxu1 %v2769_v17  ;;  %2479 = vmatprep.subr.bf16.mxu0 %v2769_v17  ;;  %s3281_s22 = scalar_lea.vmem %s3256_s4, %s2878_s30  ;;  %s2771_s20 = smov 96   ;;  %vm899_vm4 = vcmask 1043456  }
  0x1f   : > { %v654_v4 = vsel %vm653_vm1, %v2941_v2, 0.0  ;;  %v657_v5 = vsel %vm653_vm1, %v2943_v3, 0.0  ;;  %2454 = vmatpush3.bf16.msra.mxu1 %v2655_v16  ;;  %2457 = vmatprep.mubr.msk.bf16.mxu1 %vm2770_vm2, %v2769_v17  ;;  %v2347_v27 = vld [vmem:[%s3279_s28] ss:$0 sm:$0xff]  ;;  %s2772_s24 = smov 64   ;;  %s2773_s14 = smov 88  }
  0x20   : > { %655 = vadd.xlane.f32.xlu0 %v654_v4  ;;  %2455 = vmatprep.subr.bf16.mxu1 %v2769_v17  ;;  %v2348_v31 = vld [vmem:[%s3280_s16] ss:$0 sm:$0xff]  ;;  %s2774_s26 = smov 120   ;;  %s2775_s15 = smov 56  }
  0x21   : > { %2481 = vmatprep.mubr.msk.bf16.mxu0 %vm2770_vm2, %v2769_v17  ;;  %v2349_v36 = vld [vmem:[%s3281_s22] ss:$0 sm:$0xff]  ;;  %s2776_s28 = smov 80   ;;  %s2777_s29 = smov 112  }
  0x22   : > { %s3282_s13 = sld [smem:[#allocation9_spill]]  ;;  %s2778_s16 = smov 48  }
  0x23   : > { %2456 = vmatpush3.bf16.msra.mxu1 %v2656_v18  ;;  %s2779_s19 = smov 72   ;;  %s2780_s18 = smov 104  }
  0x24   : > { %658 = vadd.xlane.f32.xlu0 %v657_v5  ;;  %2461 = vmatprep.subr.bf16.mxu1 %v2769_v17  ;;  %s2781_s22 = smov 40   ;;  %p2389_p6 = scmp.ne.s32.totalorder %s2759_s25, 1 }
  0x25   : > { %vm2145_vm7 = vcmask (!%p2389_p6), 257024  }
  0xad   : > { %v656_v6 = vpop.xlane.xlu0 %655 }
  0xae   : > { %v661_v7 = vmul.f32 0.03125, %v656_v6 }
  0xb0   : > { %v663_v8 = vsub.f32 %v2941_v2, %v661_v7 }
  0xb1   : > { %v659_v9 = vpop.xlane.xlu0 %658 }
  0xb2   : > { %v662_v10 = vmul.f32 0.03125, %v659_v9  ;;  %v665_v11 = vmul.f32 %v663_v8, %v663_v8 }
  0xb4   : > { %v664_v12 = vsub.f32 %v2943_v3, %v662_v10  ;;  %v667_v13 = vsel %vm653_vm1, %v665_v11, 0.0 }
  0xb5   : > { %668 = vadd.xlane.f32.xlu1 %v667_v13 }
  0xb6   : > { %v666_v14 = vmul.f32 %v664_v12, %v664_v12 }
  0xb8   : > { %v670_v15 = vsel %vm653_vm1, %v666_v14, 0.0 }
  0xb9   : > { %671 = vadd.xlane.f32.xlu1 %v670_v15 }
 0x142   : > { %v669_v19 = vpop.xlane.xlu1 %668 }
 0x143   : > { %v673_v20 = vmul.f32 0.03125, %v669_v19 }
 0x145   : > { %v675_v21 = vadd.f32 1e-05, %v673_v20 }
 0x146   : > { %v672_v22 = vpop.xlane.xlu1 %671 }
 0x147   : > { %2667 = vrsqrt.f32 %v675_v21  ;;  %v674_v23 = vmul.f32 0.03125, %v672_v22 }
 0x149   : > { %v676_v24 = vadd.f32 1e-05, %v674_v23 }
 0x14b   : > { %2669 = vrsqrt.f32 %v676_v24 }
 0x151   : > { %v2668_v25 = vpop.eup %2667 }
 0x152   : > { %v679_v26 = vmul.f32 %v2668_v25, %v663_v8 }
 0x154   : > { %v687_v30 = vmul.f32 %v2347_v27, %v679_v26 }
 0x155   : > { %v2670_v28 = vpop.eup %2669 }
 0x156   : > { %v680_v29 = vmul.f32 %v2670_v28, %v664_v12  ;;  %v695_v33 = vadd.f32 %v2348_v31, %v687_v30 }
 0x158   : > { %v688_v32 = vmul.f32 %v2347_v27, %v680_v29 }
 0x15a   : > { %v696_v34 = vadd.f32 %v2348_v31, %v688_v32 }
 0x15c   : > { %v697_v35 = vpack.c.bf16 %v696_v34, %v695_v33 }
 0x15e   : > { %2458 = vmatmul.mubr.msk.bf16.vlgmr.msra.gmra.mrb[0].mxu1 %vm653_vm1, %v697_v35 }
 0x15f   : > { %2463 = vmatprep.mubr.msk.bf16.mxu1 %vm2770_vm2, %v2769_v17 }
 0x231   : > { %v758_v37 = vpop.f32.mrb[0].mxu1 }
 0x232   : > { %v759_v38 = vadd.f32 %v2349_v36, %v758_v37  ;;  %v2459_v39 = vpop.f32.mrb[1].mxu1 }
 0x233   : > { %v761_v40 = vpop.f32.mrb[2].mxu1 }
 0x234   : > { %v2981_v41 = vpack.c.bf16 %v759_v38, %v759_v38  ;;  %v762_v42 = vadd.f32 %v2349_v36, %v761_v40  ;;  %v2460_v43 = vpop.f32.mrb[3].mxu1 }
 0x236   : > { %v2983_v44 = vpack.c.bf16 %v762_v42, %v762_v42  ;;  %772 = vrot.lane.b32.xlu0 %v2981_v41, %s2771_s20 }
 0x238   : > { %822 = vrot.lane.b32.xlu1 %v2983_v44, %s2771_s20 }
 0x2a8   : > { %v773_v45 = vpop.permute.xlu0 %772 }
 0x2a9   : > { %v779_v46 = vsel %vm774_vm3, %v773_v45, 0 }
 0x2aa   : > { %2462 = vmatpush3.bf16.xpose.msra.mxu1 %v779_v46  ;;  %v823_v47 = vpop.permute.xlu1 %822 }
 0x2ab   : > { %2467 = vmatprep.subr.bf16.mxu1 %v2769_v17  ;;  %v828_v48 = vsel %vm774_vm3, %v823_v47, 0 }
 0x2b1   : > { %2464 = vmatmul.mubr.msk.bf16.vlgmr.msra.gmra.mrb[4].mxu1 %vm774_vm3, %v2981_v41 }
 0x2b2   : > { %2468 = vmatpush3.bf16.xpose.msra.mxu1 %v828_v48  ;;  %2469 = vmatprep.mubr.msk.bf16.mxu1 %vm2770_vm2, %v2769_v17 }
 0x2b3   : > { %2473 = vmatprep.subr.bf16.mxu1 %v2769_v17 }
 0x2b9   : > { %2470 = vmatmul.mubr.msk.bf16.vlgmr.msra.gmra.mrb[8].mxu1 %vm774_vm3, %v2983_v44 }
 0x2ba   : > { %2475 = vmatprep.mubr.msk.bf16.mxu1 %vm2770_vm2, %v2769_v17 }
 0x384   : > { %v815_v49 = vpop.f32.mrb[4].mxu1 }
 0x385   : > { %v2465_v50 = vpop.f32.mrb[5].mxu1  ;;  %v870_v51 = vsel %vm774_vm3, %v815_v49, -inf }
 0x386   : > { %871 = vmax.xlane.f32.xlu1 %v870_v51  ;;  %v818_v52 = vpop.f32.mrb[6].mxu1 }
 0x387   : > { %v2466_v53 = vpop.f32.mrb[7].mxu1 }
 0x38c   : > { %v864_v54 = vpop.f32.mrb[8].mxu1 }
 0x38d   : > { %v2471_v55 = vpop.f32.mrb[9].mxu1  ;;  %v873_v56 = vsel %vm774_vm3, %v864_v54, -inf }
 0x38e   : > { %874 = vmax.xlane.f32.xlu0 %v873_v56  ;;  %v867_v57 = vpop.f32.mrb[10].mxu1 }
 0x38f   : > { %v2472_v58 = vpop.f32.mrb[11].mxu1 }
 0x397   : > { %943 = vrot.lane.b32.xlu1 %v2983_v44, %s2772_s24 }
 0x39b   : > { %994 = vrot.lane.b32.xlu1 %v2981_v41, %s2773_s14 }
 0x413   : > { %v872_v59 = vpop.xlane.xlu1 %871 }
 0x414   : > { %v876_v60 = vsub.f32 %v815_v49, %v872_v59 }
 0x416   : > { %v878_v61 = vmul.f32 1.442695, %v876_v60 }
 0x417   : > { %v944_v62 = vpop.permute.xlu1 %943 }
 0x418   : > { %2671 = vpow2.f32 %v878_v61  ;;  %v949_v63 = vsel %vm899_vm4, %v944_v62, 0 }
 0x419   : > { %2480 = vmatpush3.bf16.msra.mxu0 %v949_v63 }
 0x41a   : > { %2491 = vmatprep.subr.bf16.mxu0 %v2769_v17 }
 0x41b   : > { %v875_v0 = vpop.xlane.xlu0 %874  ;;  %v995_v10 = vpop.permute.xlu1 %994 }
 0x41c   : > { %v877_v1 = vsub.f32 %v864_v54, %v875_v0  ;;  %v1000_v18 = vsel %vm774_vm3, %v995_v10, 0 }
 0x41e   : > { %v880_v4 = vmul.f32 1.442695, %v877_v1 }
 0x420   : > { %2673 = vpow2.f32 %v880_v4 }
 0x422   : > { %v2672_v5 = vpop.eup %2671 }
 0x423   : > { %v882_v6 = vsel %vm774_vm3, %v2672_v5, 0.0 }
 0x424   : > { %883 = vadd.xlane.f32.xlu0 %v882_v6 }
 0x42a   : > { %v2674_v7 = vpop.eup %2673 }
 0x42b   : > { %v885_v8 = vsel %vm774_vm3, %v2674_v7, 0.0 }
 0x42c   : > { %886 = vadd.xlane.f32.xlu1 %v885_v8 }
 0x43a   : > { %894 = vrot.lane.b32.xlu0 %v2981_v41, %s2772_s24 }
 0x43d   : > { %1044 = vrot.lane.b32.xlu1 %v2983_v44, %s2773_s14 }
 0x43e   : > { %992 = vrot.lane.b32.xlu0 %v2981_v41, %s2774_s26 }
 0x441   : > { %1042 = vrot.lane.b32.xlu1 %v2983_v44, %s2774_s26  ;;  %s3283_s26 = scalar_lea.vmem %s3258_s6, %s2878_s30 }
 0x4b1   : > { %v884_v9 = vpop.xlane.xlu0 %883 }
 0x4b2   : > { %2675 = vrcp.f32 %v884_v9 }
 0x4b5   : > { %v895_v11 = vpop.permute.xlu0 %894 }
 0x4b6   : > { %v901_v12 = vsel %vm899_vm4, %v895_v11, 0 }
 0x4b7   : > { %2474 = vmatpush3.bf16.msra.mxu1 %v901_v12 }
 0x4b8   : > { %2485 = vmatprep.subr.bf16.mxu1 %v2769_v17 }
 0x4b9   : > { %v887_v13 = vpop.xlane.xlu1 %886  ;;  %v993_v23 = vpop.permute.xlu0 %992 }
 0x4ba   : > { %2677 = vrcp.f32 %v887_v13  ;;  %v766_v13 = vld [vmem:[%s3282_s13 + $0x4] sm:$0xf] }
 0x4bc   : > { %v2676_v14 = vpop.eup %2675 }
 0x4bd   : > { %v889_v15 = vmul.f32 %v2676_v14, %v2672_v5  ;;  %v1045_v21 = vpop.permute.xlu1 %1044  ;;  %v765_v5 = vld [vmem:[%s3282_s13] sm:$0xf]  ;;  %v1217_v14 = vsel %vm899_vm4, %v766_v13, 0 }
 0x4be   : > { %v1050_v24 = vsel %vm774_vm3, %v1045_v21, 0  ;;  %v1264_v8 = vsel %vm899_vm4, %v765_v5, 0 }
 0x4bf   : > { %v892_v16 = vpack.c.bf16 %v889_v15, %v889_v15 }
 0x4c1   : > { %2476 = vmatmul.mubr.msk.bf16.vlgmr.msra.gmra.mrb[12].mxu1 %vm774_vm3, %v892_v16  ;;  %v1043_v25 = vpop.permute.xlu1 %1042 }
 0x4c2   : > { %2486 = vmatpush3.bf16.xpose.msra.mxu1 %v1000_v18  ;;  %2487 = vmatprep.mubr.msk.bf16.mxu1 %vm2770_vm2, %v2769_v17 }
 0x4c3   : > { %2497 = vmatprep.subr.bf16.mxu1 %v2769_v17 }
 0x4c4   : > { %v2678_v19 = vpop.eup %2677 }
 0x4c5   : > { %v891_v20 = vmul.f32 %v2678_v19, %v2674_v7 }
 0x4c7   : > { %v893_v22 = vpack.c.bf16 %v891_v20, %v891_v20 }
 0x4c9   : > { %2482 = vmatmul.mubr.msk.bf16.vlgmr.msra.gmra.mrb[0].mxu0 %vm774_vm3, %v893_v22  ;;  %2488 = vmatmul.mubr.msk.bf16.vlgmr.msra.gmra.mrb[16].mxu1 %vm774_vm3, %v993_v23 }
 0x4ca   : > { %2492 = vmatpush3.bf16.xpose.msra.mxu0 %v1050_v24  ;;  %2493 = vmatprep.mubr.msk.bf16.mxu0 %vm2770_vm2, %v2769_v17 }
 0x4cb   : > { %2503 = vmatprep.subr.bf16.mxu0 %v2769_v17  ;;  %2499 = vmatprep.mubr.msk.bf16.mxu1 %vm2770_vm2, %v2769_v17 }
 0x4d1   : > { %2494 = vmatmul.mubr.msk.bf16.vlgmr.msra.gmra.mrb[4].mxu0 %vm774_vm3, %v1043_v25 }
 0x4d2   : > { %2505 = vmatprep.mubr.msk.bf16.mxu0 %vm2770_vm2, %v2769_v17 }
 0x594   : > { %v3031_v26 = vpop.f32.mrb[12].mxu1 }
 0x595   : > { %v2477_v27 = vpop.f32.mrb[13].mxu1 }
 0x596   : > { %v940_v28 = vpop.f32.mrb[14].mxu1 }
 0x597   : > { %v2478_v29 = vpop.f32.mrb[15].mxu1 }
 0x59c   : > { %v3033_v30 = vpop.f32.mrb[0].mxu0  ;;  %v1036_v31 = vpop.f32.mrb[16].mxu1 }
 0x59d   : > { %v991_v32 = vpack.c.bf16 %v3033_v30, %v3031_v26  ;;  %v2483_v33 = vpop.f32.mrb[1].mxu0  ;;  %v2489_v34 = vpop.f32.mrb[17].mxu1  ;;  %v1092_v35 = vsel %vm774_vm3, %v1036_v31, -inf }
 0x59e   : > { %v988_v36 = vpop.f32.mrb[2].mxu0  ;;  %1093 = vmax.xlane.f32.xlu0 %v1092_v35  ;;  %v1039_v37 = vpop.f32.mrb[18].mxu1 }
 0x59f   : > { %v2484_v38 = vpop.f32.mrb[3].mxu0  ;;  %v2490_v39 = vpop.f32.mrb[19].mxu1 }
 0x5a4   : > { %v1086_v40 = vpop.f32.mrb[4].mxu0 }
 0x5a5   : > { %v2495_v42 = vpop.f32.mrb[5].mxu0  ;;  %v1095_v43 = vsel %vm774_vm3, %v1086_v40, -inf }
 0x5a6   : > { %1096 = vmax.xlane.f32.xlu1 %v1095_v43  ;;  %v1089_v45 = vpop.f32.mrb[6].mxu0 }
 0x5a7   : > { %v2496_v46 = vpop.f32.mrb[7].mxu0 }
 0x5b7   : > { %1164 = vrot.lane.b32.xlu1 %v2983_v44, %s2775_s15 }
 0x5bb   : > { %1309 = vrot.lane.b32.xlu1 %v2981_v41, %s2776_s28 }
 0x5bf   : > { %1359 = vrot.lane.b32.xlu1 %v2983_v44, %s2776_s28 }
 0x5c3   : > { %1357 = vrot.lane.b32.xlu1 %v2983_v44, %s2777_s29 }
 0x62b   : > { %v1094_v47 = vpop.xlane.xlu0 %1093 }
 0x62c   : > { %v1098_v48 = vsub.f32 %v1036_v31, %v1094_v47 }
 0x62e   : > { %v1100_v49 = vmul.f32 1.442695, %v1098_v48 }
 0x630   : > { %2679 = vpow2.f32 %v1100_v49 }
 0x633   : > { %v1097_v50 = vpop.xlane.xlu1 %1096 }
 0x634   : > { %v1099_v51 = vsub.f32 %v1086_v40, %v1097_v50 }
 0x636   : > { %v1102_v52 = vmul.f32 1.442695, %v1099_v51 }
 0x637   : > { %v1165_v53 = vpop.permute.xlu1 %1164 }
 0x638   : > { %2681 = vpow2.f32 %v1102_v52  ;;  %v1170_v54 = vsel %vm899_vm4, %v1165_v53, 0 }
 0x639   : > { %2504 = vmatpush3.bf16.msra.mxu0 %v1170_v54 }
 0x63a   : > { %v2680_v55 = vpop.eup %2679  ;;  %2515 = vmatprep.subr.bf16.mxu0 %v2769_v17 }
 0x63b   : > { %v1104_v56 = vsel %vm774_vm3, %v2680_v55, 0.0  ;;  %v1310_v9 = vpop.permute.xlu1 %1309 }
 0x63c   : > { %1105 = vadd.xlane.f32.xlu0 %v1104_v56  ;;  %v1315_v24 = vsel %vm774_vm3, %v1310_v9, 0 }
 0x63f   : > { %v1360_v10 = vpop.permute.xlu1 %1359 }
 0x640   : > { %v1365_v11 = vsel %vm774_vm3, %v1360_v10, 0 }
 0x642   : > { %v2682_v57 = vpop.eup %2681 }
 0x643   : > { %v1107_v58 = vsel %vm774_vm3, %v2682_v57, 0.0  ;;  %v1358_v12 = vpop.permute.xlu1 %1357 }
 0x644   : > { %1108 = vadd.xlane.f32.xlu0 %v1107_v58 }
 0x65a   : > { %1116 = vrot.lane.b32.xlu0 %v2981_v41, %s2775_s15 }
 0x65e   : > { %1307 = vrot.lane.b32.xlu0 %v2981_v41, %s2777_s29 }
 0x6c9   : > { %v1106_v59 = vpop.xlane.xlu0 %1105 }
 0x6ca   : > { %2683 = vrcp.f32 %v1106_v59 }
 0x6d1   : > { %v1109_v60 = vpop.xlane.xlu0 %1108 }
 0x6d2   : > { %2685 = vrcp.f32 %v1109_v60 }
 0x6d4   : > { %v2684_v61 = vpop.eup %2683 }
 0x6d5   : > { %v1111_v62 = vmul.f32 %v2684_v61, %v2680_v55  ;;  %v1117_v63 = vpop.permute.xlu0 %1116 }
 0x6d6   : > { %v1122_v0 = vsel %vm899_vm4, %v1117_v63, 0 }
 0x6d7   : > { %2498 = vmatpush3.bf16.msra.mxu1 %v1122_v0  ;;  %v1114_v1 = vpack.c.bf16 %v1111_v62, %v1111_v62 }
 0x6d8   : > { %2509 = vmatprep.subr.bf16.mxu1 %v2769_v17 }
 0x6d9   : > { %v1308_v28 = vpop.permute.xlu0 %1307 }
 0x6da   : > { %2500 = vmatmul.mubr.msk.bf16.vlgmr.msra.gmra.mrb[20].mxu1 %vm774_vm3, %v1114_v1 }
 0x6db   : > { %2511 = vmatprep.mubr.msk.bf16.mxu1 %vm2770_vm2, %v2769_v17  ;;  %2510 = vmatpush3.bf16.msra.mxu1 %v1217_v14 }
 0x6dc   : > { %v2686_v4 = vpop.eup %2685  ;;  %2521 = vmatprep.subr.bf16.mxu1 %v2769_v17 }
 0x6dd   : > { %v1113_v6 = vmul.f32 %v2686_v4, %v2682_v57 }
 0x6df   : > { %v1115_v7 = vpack.c.bf16 %v1113_v6, %v1113_v6 }
 0x6e1   : > { %2506 = vmatmul.mubr.msk.bf16.vlgmr.msra.gmra.mrb[8].mxu0 %vm774_vm3, %v1115_v7 }
 0x6e2   : > { %2516 = vmatpush3.bf16.msra.mxu0 %v1264_v8  ;;  %2517 = vmatprep.mubr.msk.bf16.mxu0 %vm2770_vm2, %v2769_v17 }
 0x6e3   : > { %2527 = vmatprep.subr.bf16.mxu0 %v2769_v17 }
 0x6e9   : > { %2518 = vmatmul.mubr.msk.bf16.vlgmr.msra.gmra.mrb[12].mxu0 %vm774_vm3, %v991_v32 }
 0x6ea   : > { %2529 = vmatprep.mubr.msk.bf16.mxu0 %vm2770_vm2, %v2769_v17 }
 0x6eb   : > { %2528 = vmatpush3.bf16.xpose.msra.mxu0 %v1365_v11 }
 0x6ec   : > { %2539 = vmatprep.subr.bf16.mxu0 %v2769_v17 }
 0x6f2   : > { %2530 = vmatmul.mubr.msk.bf16.vlgmr.msra.gmra.mrb[16].mxu0 %vm774_vm3, %v1358_v12 }
 0x6f3   : > { %2541 = vmatprep.mubr.msk.bf16.mxu0 %vm2770_vm2, %v2769_v17 }
 0x7ad   : > { %v1158_v15 = vpop.f32.mrb[20].mxu1 }
 0x7ae   : > { %v2501_v16 = vpop.f32.mrb[21].mxu1 }
 0x7af   : > { %v1161_v18 = vpop.f32.mrb[22].mxu1  ;;  %v767_v16 = vld [vmem:[%s3282_s13 + $0x8] sm:$0xf] }
 0x7b0   : > { %v2502_v19 = vpop.f32.mrb[23].mxu1  ;;  %v1532_v18 = vsel %vm899_vm4, %v767_v16, 0 }
 0x7b4   : > { %v1206_v20 = vpop.f32.mrb[8].mxu0 }
 0x7b5   : > { %v1212_v21 = vpack.c.bf16 %v1206_v20, %v1158_v15  ;;  %v2507_v22 = vpop.f32.mrb[9].mxu0 }
 0x7b6   : > { %v1209_v23 = vpop.f32.mrb[10].mxu0 }
 0x7b7   : > { %v2508_v25 = vpop.f32.mrb[11].mxu0  ;;  %2512 = vmatmul.mubr.msk.bf16.vlgmr.msra.gmra.mrb[24].mxu1 %vm774_vm3, %v1212_v21 }
 0x7b8   : > { %2522 = vmatpush3.bf16.xpose.msra.mxu1 %v1315_v24  ;;  %2523 = vmatprep.mubr.msk.bf16.mxu1 %vm2770_vm2, %v2769_v17 }
 0x7b9   : > { %2533 = vmatprep.subr.bf16.mxu1 %v2769_v17 }
 0x7bc   : > { %v1300_v26 = vpop.f32.mrb[12].mxu0 }
 0x7bd   : > { %v2519_v27 = vpop.f32.mrb[13].mxu0 }
 0x7be   : > { %v1303_v29 = vpop.f32.mrb[14].mxu0 }
 0x7bf   : > { %v2520_v30 = vpop.f32.mrb[15].mxu0  ;;  %2524 = vmatmul.mubr.msk.bf16.vlgmr.msra.gmra.mrb[28].mxu1 %vm774_vm3, %v1308_v28 }
 0x7c0   : > { %2535 = vmatprep.mubr.msk.bf16.mxu1 %vm2770_vm2, %v2769_v17 }
 0x7c5   : > { %v1401_v31 = vpop.f32.mrb[16].mxu0 }
 0x7c6   : > { %v2531_v32 = vpop.f32.mrb[17].mxu0  ;;  %v1410_v33 = vsel %vm774_vm3, %v1401_v31, -inf }
 0x7c7   : > { %1411 = vmax.xlane.f32.xlu1 %v1410_v33  ;;  %v1404_v34 = vpop.f32.mrb[18].mxu0 }
 0x7c8   : > { %v2532_v35 = vpop.f32.mrb[19].mxu0 }
 0x7d8   : > { %1479 = vrot.lane.b32.xlu1 %v2983_v44, %s2778_s16 }
 0x7dc   : > { %1579 = vrot.lane.b32.xlu1 %v2981_v41, %s2779_s19 }
 0x7e0   : > { %1629 = vrot.lane.b32.xlu1 %v2983_v44, %s2779_s19 }
 0x7e4   : > { %1627 = vrot.lane.b32.xlu1 %v2983_v44, %s2780_s18 }
 0x854   : > { %v1412_v36 = vpop.xlane.xlu1 %1411 }
 0x855   : > { %v1414_v39 = vsub.f32 %v1401_v31, %v1412_v36 }
 0x857   : > { %v1417_v40 = vmul.f32 1.442695, %v1414_v39 }
 0x858   : > { %v1480_v37 = vpop.permute.xlu1 %1479 }
 0x859   : > { %v1485_v38 = vsel %vm899_vm4, %v1480_v37, 0  ;;  %2687 = vpow2.f32 %v1417_v40 }
 0x85a   : > { %2540 = vmatpush3.bf16.msra.mxu0 %v1485_v38 }
 0x85b   : > { %2551 = vmatprep.subr.bf16.mxu0 %v2769_v17 }
 0x85c   : > { %v1580_v0 = vpop.permute.xlu1 %1579 }
 0x85d   : > { %v1585_v4 = vsel %vm774_vm3, %v1580_v0, 0 }
 0x860   : > { %v1630_v24 = vpop.permute.xlu1 %1629 }
 0x863   : > { %v2688_v52 = vpop.eup %2687 }
 0x864   : > { %v1422_v55 = vsel %vm774_vm3, %v2688_v52, 0.0  ;;  %v1628_v31 = vpop.permute.xlu1 %1627 }
 0x88a   : > { %v1253_v42 = vpop.f32.mrb[24].mxu1 }
 0x88b   : > { %v3091_v43 = vadd.f32 %v1300_v26, %v1253_v42  ;;  %v2513_v45 = vpop.f32.mrb[25].mxu1 }
 0x88c   : > { %v1256_v46 = vpop.f32.mrb[26].mxu1 }
 0x88d   : > { %v3093_v47 = vadd.f32 %v1303_v29, %v1256_v46  ;;  %v2514_v48 = vpop.f32.mrb[27].mxu1  ;;  %v1635_v29 = vsel %vm774_vm3, %v1630_v24, 0 }
 0x892   : > { %v1351_v49 = vpop.f32.mrb[28].mxu1 }
 0x893   : > { %v2525_v50 = vpop.f32.mrb[29].mxu1  ;;  %v1407_v51 = vsel %vm774_vm3, %v1351_v49, -inf }
 0x894   : > { %1408 = vmax.xlane.f32.xlu0 %v1407_v51  ;;  %v1354_v53 = vpop.f32.mrb[30].mxu1 }
 0x895   : > { %v2526_v54 = vpop.f32.mrb[31].mxu1 }
 0x898   : > { %1423 = vadd.xlane.f32.xlu0 %v1422_v55 }
 0x921   : > { %v1409_v56 = vpop.xlane.xlu0 %1408 }
 0x922   : > { %v1413_v57 = vsub.f32 %v1351_v49, %v1409_v56 }
 0x924   : > { %v1415_v58 = vmul.f32 1.442695, %v1413_v57 }
 0x925   : > { %v1424_v59 = vpop.xlane.xlu0 %1423 }
 0x926   : > { %2689 = vpow2.f32 %v1415_v58 }
 0x927   : > { %2691 = vrcp.f32 %v1424_v59 }
 0x930   : > { %v2690_v60 = vpop.eup %2689 }
 0x931   : > { %v2692_v61 = vpop.eup %2691  ;;  %v1419_v62 = vsel %vm774_vm3, %v2690_v60, 0.0 }
 0x932   : > { %v1428_v63 = vmul.f32 %v2692_v61, %v2688_v52  ;;  %1420 = vadd.xlane.f32.xlu0 %v1419_v62 }
 0x934   : > { %v1430_v1 = vpack.c.bf16 %v1428_v63, %v1428_v63 }
 0x936   : > { %2542 = vmatmul.mubr.msk.bf16.vlgmr.msra.gmra.mrb[20].mxu0 %vm774_vm3, %v1430_v1  ;;  %v768_v1 = vld [vmem:[%s3282_s13 + $0xc] sm:$0xf] }
 0x937   : > { %2552 = vmatpush3.bf16.xpose.msra.mxu0 %v1585_v4  ;;  %2553 = vmatprep.mubr.msk.bf16.mxu0 %vm2770_vm2, %v2769_v17  ;;  %v1802_v4 = vsel %vm899_vm4, %v768_v1, 0 }
 0x938   : > { %2563 = vmatprep.subr.bf16.mxu0 %v2769_v17 }
 0x948   : > { %1431 = vrot.lane.b32.xlu0 %v2981_v41, %s2778_s16 }
 0x94c   : > { %1577 = vrot.lane.b32.xlu0 %v2981_v41, %s2780_s18 }
 0x9bf   : > { %v1421_v5 = vpop.xlane.xlu0 %1420 }
 0x9c0   : > { %2693 = vrcp.f32 %v1421_v5 }
 0x9c3   : > { %v1432_v6 = vpop.permute.xlu0 %1431 }
 0x9c4   : > { %v1437_v7 = vsel %vm899_vm4, %v1432_v6, 0 }
 0x9c5   : > { %2534 = vmatpush3.bf16.msra.mxu1 %v1437_v7 }
 0x9c6   : > { %2545 = vmatprep.subr.bf16.mxu1 %v2769_v17 }
 0x9c7   : > { %v1578_v8 = vpop.permute.xlu0 %1577 }
 0x9c8   : > { %2554 = vmatmul.mubr.msk.bf16.vlgmr.msra.gmra.mrb[24].mxu0 %vm774_vm3, %v1578_v8 }
 0x9c9   : > { %2565 = vmatprep.mubr.msk.bf16.mxu0 %vm2770_vm2, %v2769_v17 }
 0x9ca   : > { %v2694_v9 = vpop.eup %2693 }
 0x9cb   : > { %v1426_v10 = vmul.f32 %v2694_v9, %v2690_v60 }
 0x9cd   : > { %v1429_v11 = vpack.c.bf16 %v1426_v10, %v1426_v10 }
 0x9cf   : > { %2536 = vmatmul.mubr.msk.bf16.vlgmr.msra.gmra.mrb[32].mxu1 %vm774_vm3, %v1429_v11 }
 0x9d0   : > { %2547 = vmatprep.mubr.msk.bf16.mxu1 %vm2770_vm2, %v2769_v17  ;;  %2546 = vmatpush3.bf16.msra.mxu1 %v1532_v18 }
 0x9d1   : > { %2557 = vmatprep.subr.bf16.mxu1 %v2769_v17 }
 0xa09   : > { %v1521_v12 = vpop.f32.mrb[20].mxu0 }
 0xa0a   : > { %v2543_v13 = vpop.f32.mrb[21].mxu0 }
 0xa0b   : > { %v1524_v14 = vpop.f32.mrb[22].mxu0 }
 0xa0c   : > { %v2544_v15 = vpop.f32.mrb[23].mxu0 }
 0xa0d   : > { %v2373_v15 = vld [vmem:[%s3283_s26] ss:$0 sm:$0xff] }
 0xa9b   : > { %v1621_v19 = vpop.f32.mrb[24].mxu0 }
 0xa9c   : > { %v2555_v20 = vpop.f32.mrb[25].mxu0  ;;  %v1677_v21 = vsel %vm774_vm3, %v1621_v19, -inf }
 0xa9d   : > { %1678 = vmax.xlane.f32.xlu0 %v1677_v21  ;;  %v1624_v22 = vpop.f32.mrb[26].mxu0 }
 0xa9e   : > { %v2556_v23 = vpop.f32.mrb[27].mxu0 }
 0xaa2   : > { %v1473_v25 = vpop.f32.mrb[32].mxu1 }
 0xaa3   : > { %v1527_v26 = vpack.c.bf16 %v1521_v12, %v1473_v25  ;;  %v2537_v27 = vpop.f32.mrb[33].mxu1 }
 0xaa4   : > { %v1476_v28 = vpop.f32.mrb[34].mxu1 }
 0xaa5   : > { %v2538_v30 = vpop.f32.mrb[35].mxu1  ;;  %2548 = vmatmul.mubr.msk.bf16.vlgmr.msra.gmra.mrb[36].mxu1 %vm774_vm3, %v1527_v26 }
 0xaa6   : > { %2558 = vmatpush3.bf16.xpose.msra.mxu1 %v1635_v29  ;;  %2559 = vmatprep.mubr.msk.bf16.mxu1 %vm2770_vm2, %v2769_v17 }
 0xaa7   : > { %2569 = vmatprep.subr.bf16.mxu1 %v2769_v17 }
 0xaad   : > { %2560 = vmatmul.mubr.msk.bf16.vlgmr.msra.gmra.mrb[40].mxu1 %vm774_vm3, %v1628_v31 }
 0xaae   : > { %2571 = vmatprep.mubr.msk.bf16.mxu1 %vm2770_vm2, %v2769_v17 }
 0xb2a   : > { %v1679_v32 = vpop.xlane.xlu0 %1678 }
 0xb2b   : > { %v1683_v33 = vsub.f32 %v1621_v19, %v1679_v32 }
 0xb2d   : > { %v1685_v34 = vmul.f32 1.442695, %v1683_v33 }
 0xb2f   : > { %2695 = vpow2.f32 %v1685_v34 }
 0xb39   : > { %v2696_v35 = vpop.eup %2695 }
 0xb3a   : > { %v1689_v36 = vsel %vm774_vm3, %v2696_v35, 0.0 }
 0xb3b   : > { %1690 = vadd.xlane.f32.xlu0 %v1689_v36  ;;  %v2657_v36 = vld [vmem:[%s2918_s3] sm:$0xff]  }
 0xb78   : > { %v1568_v37 = vpop.f32.mrb[36].mxu1 }
 0xb79   : > { %v1575_v38 = vadd.f32 %v1568_v37, %v3091_v43  ;;  %v2549_v39 = vpop.f32.mrb[37].mxu1  ;;  %v2658_v37 = vld [vmem:[%s2918_s3 + $0x8] sm:$0xff]  }
 0xb7a   : > { %v1571_v40 = vpop.f32.mrb[38].mxu1 }
 0xb7b   : > { %v1576_v42 = vadd.f32 %v1571_v40, %v3093_v47  ;;  %v2550_v45 = vpop.f32.mrb[39].mxu1 }
 0xb80   : > { %v1671_v46 = vpop.f32.mrb[40].mxu1 }
 0xb81   : > { %v2561_v48 = vpop.f32.mrb[41].mxu1  ;;  %v1680_v49 = vsel %vm774_vm3, %v1671_v46, -inf }
 0xb82   : > { %1681 = vmax.xlane.f32.xlu1 %v1680_v49  ;;  %v1674_v50 = vpop.f32.mrb[42].mxu1  ;;  %v2374_v49 = vld [vmem:[%s618_s27] ss:$0 sm:$0xff] }
 0xb83   : > { %v2562_v51 = vpop.f32.mrb[43].mxu1 }
 0xb93   : > { %1749 = vrot.lane.b32.xlu1 %v2983_v44, %s2781_s22 }
 0xbc8   : > { %v1691_v57 = vpop.xlane.xlu0 %1690 }
 0xc0f   : > { %v1682_v52 = vpop.xlane.xlu1 %1681 }
 0xc10   : > { %v1684_v53 = vsub.f32 %v1671_v46, %v1682_v52 }
 0xc12   : > { %v1687_v54 = vmul.f32 1.442695, %v1684_v53 }
 0xc13   : > { %v1750_v55 = vpop.permute.xlu1 %1749 }
 0xc14   : > { %2697 = vpow2.f32 %v1687_v54  ;;  %v1755_v43 = vsel %vm899_vm4, %v1750_v55, 0  ;;  %v2375_v54 = vld [vmem:[%s621_s23] ss:$0 sm:$0xff] }
 0xc15   : > { %2570 = vmatpush3.bf16.msra.mxu1 %v1755_v43  ;;  %2699 = vrcp.f32 %v1691_v57  ;;  %v2659_v57 = vld [vmem:[%s2928_s17] sm:$0xff]  }
 0xc16   : > { %2581 = vmatprep.subr.bf16.mxu1 %v2769_v17 }
 0xc1e   : > { %v2698_v47 = vpop.eup %2697 }
 0xc1f   : > { %v1692_v56 = vsel %vm774_vm3, %v2698_v47, 0.0  ;;  %v2700_v58 = vpop.eup %2699 }
 0xc20   : > { %1693 = vadd.xlane.f32.xlu0 %v1692_v56  ;;  %v1696_v59 = vmul.f32 %v2700_v58, %v2696_v35  ;;  %v2660_v58 = vld [vmem:[%s2928_s17 + $0x8] sm:$0xff]  }
 0xc22   : > { %v1699_v62 = vpack.c.bf16 %v1696_v59, %v1696_v59  ;;  %v2662_v59 = vld [vmem:[%s2928_s17 + $0x18] sm:$0xff]  }
 0xc36   : > { %1701 = vrot.lane.b32.xlu0 %v2981_v41, %s2781_s22 }
 0xcad   : > { %v1694_v44 = vpop.xlane.xlu0 %1693 }
 0xcae   : > { %2701 = vrcp.f32 %v1694_v44  ;;  %v2661_v44 = vld [vmem:[%s2928_s17 + $0x10] sm:$0xff]  }
 0xcb1   : > { %v1702_v60 = vpop.permute.xlu0 %1701 }
 0xcb2   : > { %v1707_v61 = vsel %vm899_vm4, %v1702_v60, 0  ;;  %v2663_v60 = vld [vmem:[%s2928_s17 + $0x20] sm:$0xff]  }
 0xcb3   : > { %2564 = vmatpush3.bf16.msra.mxu0 %v1707_v61  ;;  %v2664_v61 = vld [vmem:[%s2928_s17 + $0x28] sm:$0xff]  }
 0xcb4   : > { %2575 = vmatprep.subr.bf16.mxu0 %v2769_v17 }
 0xcb6   : > { %2566 = vmatmul.mubr.msk.bf16.vlgmr.msra.gmra.mrb[28].mxu0 %vm774_vm3, %v1699_v62  ;;  %v2665_v62 = vld [vmem:[%s2928_s17 + $0x30] sm:$0xff]  }
 0xcb7   : > { %2577 = vmatprep.mubr.msk.bf16.mxu0 %vm2770_vm2, %v2769_v17  ;;  %2576 = vmatpush3.bf16.msra.mxu0 %v1802_v4 }
 0xcb8   : > { %v2702_v41 = vpop.eup %2701  ;;  %2589 = vmatprep.subr.bf16.mxu0 %v2769_v17 }
 0xcb9   : > { %v1698_v63 = vmul.f32 %v2702_v41, %v2698_v47  ;;  %v2666_v41 = vld [vmem:[%s2928_s17 + $0x38] sm:$0xff]  }
 0xcbb   : > { %v1700_v0 = vpack.c.bf16 %v1698_v63, %v1698_v63  ;;  %v2376_v63 = vld [vmem:[%s629_s5] ss:$0 sm:$0xff] }
 0xcbd   : > { %2572 = vmatmul.mubr.msk.bf16.vlgmr.msra.gmra.mrb[44].mxu1 %vm774_vm3, %v1700_v0 }
 0xcbe   : > { %2585 = vmatprep.mubr.msk.bf16.mxu1 %vm2770_vm2, %v2769_v17  ;;  %2582 = vmatpush3.bf16.msra.mxu1 %v2657_v36 }
 0xcbf   : > { %2583 = vmatprep.subr.bf16.mxu1 %v2769_v17 }
 0xcc2   : > { %2584 = vmatpush3.bf16.msra.mxu1 %v2658_v37 }
 0xd89   : > { %v1743_v5 = vpop.f32.mrb[28].mxu0 }
 0xd8a   : > { %v2567_v6 = vpop.f32.mrb[29].mxu0 }
 0xd8b   : > { %v1746_v7 = vpop.f32.mrb[30].mxu0 }
 0xd8c   : > { %v2568_v8 = vpop.f32.mrb[31].mxu0 }
 0xd90   : > { %v1791_v9 = vpop.f32.mrb[44].mxu1 }
 0xd91   : > { %v1797_v10 = vpack.c.bf16 %v1791_v9, %v1743_v5  ;;  %v2573_v11 = vpop.f32.mrb[45].mxu1 }
 0xd92   : > { %v1794_v12 = vpop.f32.mrb[46].mxu1 }
 0xd93   : > { %v2574_v13 = vpop.f32.mrb[47].mxu1  ;;  %2578 = vmatmul.mubr.msk.bf16.vlgmr.msra.gmra.mrb[32].mxu0 %vm774_vm3, %v1797_v10 }
 0xd94   : > { %2605 = vmatprep.mubr.msk.bf16.mxu0 %vm2770_vm2, %v2769_v17  ;;  %2590 = vmatpush3.bf16.msra.mxu0 %v2659_v57 }
 0xd95   : > { %2591 = vmatprep.subr.bf16.mxu0 %v2769_v17 }
 0xd98   : > { %2592 = vmatpush3.bf16.msra.mxu0 %v2660_v58 }
 0xd99   : > { %2593 = vmatprep.subr.bf16.mxu0 %v2769_v17 }
 0xd9c   : > { %2594 = vmatpush3.bf16.msra.mxu0 %v2661_v44 }
 0xd9d   : > { %2595 = vmatprep.subr.bf16.mxu0 %v2769_v17 }
 0xda0   : > { %2596 = vmatpush3.bf16.msra.mxu0 %v2662_v59 }
 0xda1   : > { %2597 = vmatprep.subr.bf16.mxu0 %v2769_v17 }
 0xda4   : > { %2598 = vmatpush3.bf16.msra.mxu0 %v2663_v60 }
 0xda5   : > { %2599 = vmatprep.subr.bf16.mxu0 %v2769_v17 }
 0xda8   : > { %2600 = vmatpush3.bf16.msra.mxu0 %v2664_v61  ;;  %v2380_v61 = vld [vmem:[%s637_s21] ss:$0 sm:$0xff] }
 0xda9   : > { %2601 = vmatprep.subr.bf16.mxu0 %v2769_v17 }
 0xdac   : > { %2602 = vmatpush3.bf16.msra.mxu0 %v2665_v62 }
 0xdad   : > { %2603 = vmatprep.subr.bf16.mxu0 %v2769_v17 }
 0xdb0   : > { %2604 = vmatpush3.bf16.msra.mxu0 %v2666_v41 }
 0xe66   : > { %v1838_v14 = vpop.f32.mrb[32].mxu0 }
 0xe67   : > { %v1845_v16 = vadd.f32 %v1838_v14, %v1575_v38  ;;  %v2579_v18 = vpop.f32.mrb[33].mxu0 }
 0xe68   : > { %v1841_v19 = vpop.f32.mrb[34].mxu0 }
 0xe69   : > { %v1854_v20 = vadd.f32 %v2373_v15, %v1845_v16  ;;  %v1846_v21 = vadd.f32 %v1841_v19, %v1576_v42  ;;  %v2580_v22 = vpop.f32.mrb[35].mxu0 }
 0xe6b   : > { %v3156_v23 = vadd.f32 %v1854_v20, %v2941_v2  ;;  %v1855_v24 = vadd.f32 %v2373_v15, %v1846_v21 }
 0xe6d   : > { %v3159_v25 = vadd.f32 %v1855_v24, %v2943_v3  ;;  %v1860_v26 = vsel %vm653_vm1, %v3156_v23, 0.0 }
 0xe6e   : > { %1861 = vadd.xlane.f32.xlu1 %v1860_v26 }
 0xe6f   : > { %v1863_v27 = vsel %vm653_vm1, %v3159_v25, 0.0 }
 0xe70   : > { %1864 = vadd.xlane.f32.xlu0 %v1863_v27 }
 0xefb   : > { %v1862_v28 = vpop.xlane.xlu1 %1861 }
 0xefc   : > { %v1866_v29 = vmul.f32 0.03125, %v1862_v28 }
 0xefd   : > { %v1865_v30 = vpop.xlane.xlu0 %1864 }
 0xefe   : > { %v1868_v2 = vsub.f32 %v3156_v23, %v1866_v29  ;;  %v1867_v31 = vmul.f32 0.03125, %v1865_v30 }
 0xf00   : > { %v1869_v32 = vsub.f32 %v3159_v25, %v1867_v31  ;;  %v1870_v3 = vmul.f32 %v1868_v2, %v1868_v2 }
 0xf02   : > { %v1872_v33 = vsel %vm653_vm1, %v1870_v3, 0.0  ;;  %v1871_v34 = vmul.f32 %v1869_v32, %v1869_v32 }
 0xf03   : > { %1873 = vadd.xlane.f32.xlu0 %v1872_v33 }
 0xf04   : > { %v1875_v35 = vsel %vm653_vm1, %v1871_v34, 0.0 }
 0xf05   : > { %1876 = vadd.xlane.f32.xlu1 %v1875_v35 }
 0xf90   : > { %v1874_v38 = vpop.xlane.xlu0 %1873 }
 0xf91   : > { %v1878_v39 = vmul.f32 0.03125, %v1874_v38 }
 0xf92   : > { %v1877_v40 = vpop.xlane.xlu1 %1876 }
 0xf93   : > { %v1880_v42 = vadd.f32 1e-05, %v1878_v39  ;;  %v1879_v45 = vmul.f32 0.03125, %v1877_v40 }
 0xf95   : > { %2703 = vrsqrt.f32 %v1880_v42  ;;  %v1881_v46 = vadd.f32 1e-05, %v1879_v45 }
 0xf97   : > { %2705 = vrsqrt.f32 %v1881_v46 }
 0xf9f   : > { %v2704_v48 = vpop.eup %2703 }
 0xfa0   : > { %v1884_v50 = vmul.f32 %v2704_v48, %v1868_v2 }
 0xfa1   : > { %v2706_v51 = vpop.eup %2705 }
 0xfa2   : > { %v1892_v52 = vmul.f32 %v2374_v49, %v1884_v50  ;;  %v1885_v53 = vmul.f32 %v2706_v51, %v1869_v32  ;;  %v2782_v50 = vmov 1.0  }
 0xfa4   : > { %v1893_v55 = vmul.f32 %v2374_v49, %v1885_v53  ;;  %v1900_v43 = vadd.f32 %v2375_v54, %v1892_v52 }
 0xfa6   : > { %v1901_v47 = vadd.f32 %v2375_v54, %v1893_v55 }
 0xfa8   : > { %v1902_v56 = vpack.c.bf16 %v1901_v47, %v1900_v43 }
 0xfaa   : > { %2586 = vmatmul.mubr.msk.bf16.vlgmr.msra.gmra.mrb[48].mxu1 %vm653_vm1, %v1902_v56 }
0x107d   : > { %v1963_v0 = vpop.f32.mrb[48].mxu1 }
0x107e   : > { %v1964_v1 = vadd.f32 %v2376_v63, %v1963_v0  ;;  %v2587_v4 = vpop.f32.mrb[49].mxu1 }
0x107f   : > { %v1966_v5 = vpop.f32.mrb[50].mxu1 }
0x1080   : > { %v1972_v6 = vmul.f32 0.70710677, %v1964_v1  ;;  %v1967_v7 = vadd.f32 %v2376_v63, %v1966_v5  ;;  %v2588_v8 = vpop.f32.mrb[51].mxu1  ;;  %v1970_v56 = vmul.f32 0.5, %v1964_v1 }
0x1082   : > { %v1978_v9 = vand.u32 2147483647, %v1972_v6  ;;  %v1973_v10 = vmul.f32 0.70710677, %v1967_v7  ;;  %vm1974_vm5 = vcmp.lt.f32.partialorder %v1972_v6, 0.0  ;;  %v1971_v57 = vmul.f32 0.5, %v1967_v7 }
0x1083   : > { %v1976_v51 = vsel %vm1974_vm5, -1.0, %v2782_v50 }
0x1084   : > { %v1980_v11 = vmul.f32 0.3275911, %v1978_v9  ;;  %v1979_v12 = vand.u32 2147483647, %v1973_v10  ;;  %v2004_v15 = vsub.f32 0.0, %v1978_v9  ;;  %vm1975_vm6 = vcmp.lt.f32.partialorder %v1973_v10, 0.0 }
0x1085   : > { %v1977_v55 = vsel %vm1975_vm6, -1.0, %v2782_v50 }
0x1086   : > { %v1982_v13 = vadd.f32 1.0, %v1980_v11  ;;  %v1981_v17 = vmul.f32 0.3275911, %v1979_v12  ;;  %v2005_v16 = vsub.f32 0.0, %v1979_v12  ;;  %v2006_v19 = vmul.f32 %v2004_v15, %v1978_v9 }
0x1088   : > { %2707 = vrcp.f32 %v1982_v13  ;;  %v1983_v14 = vadd.f32 1.0, %v1981_v17  ;;  %v2007_v24 = vmul.f32 %v2005_v16, %v1979_v12  ;;  %v2008_v26 = vmul.f32 1.442695, %v2006_v19 }
0x108a   : > { %2709 = vrcp.f32 %v1983_v14  ;;  %v2010_v2 = vmul.f32 1.442695, %v2007_v24 }
0x108b   : > { %2711 = vpow2.f32 %v2008_v26 }
0x108c   : > { %2713 = vpow2.f32 %v2010_v2 }
0x1092   : > { %v2708_v18 = vpop.eup %2707 }
0x1093   : > { %v1986_v20 = vmul.f32 1.0614054, %v2708_v18 }
0x1094   : > { %v2710_v21 = vpop.eup %2709 }
0x1095   : > { %v1988_v22 = vadd.f32 -1.4531521, %v1986_v20  ;;  %v1987_v27 = vmul.f32 1.0614054, %v2710_v21  ;;  %v2712_v40 = vpop.eup %2711 }
0x1096   : > { %v2714_v48 = vpop.eup %2713 }
0x1097   : > { %v1990_v28 = vmul.f32 %v2708_v18, %v1988_v22  ;;  %v1989_v29 = vadd.f32 -1.4531521, %v1987_v27 }
0x1099   : > { %v1992_v30 = vadd.f32 1.4214138, %v1990_v28  ;;  %v1991_v31 = vmul.f32 %v2710_v21, %v1989_v29 }
0x109b   : > { %v1994_v32 = vmul.f32 %v2708_v18, %v1992_v30  ;;  %v1993_v3 = vadd.f32 1.4214138, %v1991_v31 }
0x109d   : > { %v1996_v33 = vadd.f32 -0.28449672, %v1994_v32  ;;  %v1995_v34 = vmul.f32 %v2710_v21, %v1993_v3 }
0x109f   : > { %v1998_v35 = vmul.f32 %v2708_v18, %v1996_v33  ;;  %v1997_v36 = vadd.f32 -0.28449672, %v1995_v34 }
0x10a1   : > { %v2000_v37 = vadd.f32 0.2548296, %v1998_v35  ;;  %v1999_v38 = vmul.f32 %v2710_v21, %v1997_v36 }
0x10a3   : > { %v2002_v39 = vmul.f32 %v2708_v18, %v2000_v37  ;;  %v2001_v42 = vadd.f32 0.2548296, %v1999_v38 }
0x10a5   : > { %v2012_v45 = vmul.f32 %v2712_v40, %v2002_v39  ;;  %v2003_v46 = vmul.f32 %v2710_v21, %v2001_v42 }
0x10a7   : > { %v2014_v49 = vsub.f32 1.0, %v2012_v45  ;;  %v2013_v52 = vmul.f32 %v2714_v48, %v2003_v46 }
0x10a9   : > { %v2016_v53 = vmul.f32 %v2014_v49, %v1976_v51  ;;  %v2015_v54 = vsub.f32 1.0, %v2013_v52 }
0x10ab   : > { %v2018_v43 = vadd.f32 1.0, %v2016_v53  ;;  %v2017_v47 = vmul.f32 %v2015_v54, %v1977_v55 }
0x10ad   : > { %v2019_v58 = vadd.f32 1.0, %v2017_v47  ;;  %v2020_v44 = vmul.f32 %v2018_v43, %v1970_v56 }
0x10af   : > { %v2021_v59 = vmul.f32 %v2019_v58, %v1971_v57 }
0x10b1   : > { %v2022_v60 = vpack.c.bf16 %v2021_v59, %v2020_v44 }
0x10b3   : > { %2606 = vmatmul.mubr.bf16.vlgmr.msra.gmra.mrb[36].mxu0 %v2022_v60 }
0x1186   : > { %v2128_v62 = vpop.f32.mrb[36].mxu0 }
0x1187   : > { %v2129_v41 = vadd.f32 %v2380_v61, %v2128_v62  ;;  %v2607_v63 = vpop.f32.mrb[37].mxu0  ;;  %2142 = sbr.rel (%p2389_p6) target bundleno = 4496 (0x1190), region = 80 }
0x1188   : > { %v2131_v0 = vpop.f32.mrb[38].mxu0 }
0x1189   : > { %v2135_v4 = vadd.f32 %v2129_v41, %v3156_v23  ;;  %v2132_v5 = vadd.f32 %v2380_v61, %v2131_v0  ;;  %v2608_v6 = vpop.f32.mrb[39].mxu0 }
0x118b   : > { %2137 = vst.msk [vmem:[#allocation2] sm:$0xff] %vm653_vm1, %v2135_v4  ;;  %v2136_v1 = vadd.f32 %v2132_v5, %v3159_v25  ;;  %v2143_v7 = vpack.c.bf16 (!%p2389_p6), %v2135_v4, %v2135_v4 }
0x118d   : > { %2138 = vst.msk [vmem:[#allocation2 + $0x8] sm:$0xff] %vm653_vm1, %v2136_v1  ;;  %v2144_v8 = vpack.c.bf16 (!%p2389_p6), %v2136_v1, %v2136_v1 }
0x118e   : > { %2146 = vst.msk [vmem:[#allocation3] sm:$0xf] %vm2145_vm7, %v2143_v7 }
0x118f   : > { %2147 = vst.msk [vmem:[#allocation3 + $0x4] sm:$0xf] %vm2145_vm7, %v2144_v8 }
0x1190 PF: > { %s3284_s30 = sld [smem:[#allocation7_spill]]  ;;  %s2783_s16 = smov [#allocation3]  }
0x1191   : > { %s2157_s19 = sshll.u32 %s2783_s16, 4  ;;  %s2158_s19 = int_to_ptr.vmem [resolvable:$true] %s2157_s19 }
0x1192   : > { %s2715_s18 = scalar_lea.vmem %s2158_s19, 128  ;;  %p2722_p11 = scmp.lt.s32.totalorder %s2158_s19, %s2158_s19 }
0x1193   : > { %p2716_p8 = scmp.ne.s32.totalorder %s2158_s19, %s2715_s18  ;;  %p2723_p12 = scmp.lt.s32.totalorder %s2715_s18, %s2715_s18 }
0x1195   : > { %p2724_p13 = por %p2723_p12, %p2722_p11 }
0x1196   : > { %s3285_s21 = sadd.s32 4294967295, %s3284_s30  }
0x1197   : > { %p3215_p7 = scmp.eq.s32.totalorder %s3285_s21, 1 }
0x1199   : > { %p2717_p9 = pnand %p2716_p8, %p3215_p7 }
0x119b   : > { %p2718_p10 = pneg %p2717_p9 }
0x119d   : > { %p2725_p0 = pnand %p2724_p13, %p2718_p10 }
0x119f   : > { %2728 = shalt.err (!%p2725_p0)
}
0x11a0   : > { %s3287_s20 = sld [smem:[#allocation12_spill]] }
0x11a6   : > { %s2729_s14 = scalar_lea.hbm %s3287_s20, 128 }
0x11a7   : > { %p2730_p1 = scmp.ne.s32.totalorder %s3287_s20, %s2729_s14  ;;  %p2735_p4 = scmp.lt.u32.totalorder %s2729_s14, %s3287_s20 }
0x11a9   : > { %p2731_p2 = pnand %p2730_p1, %p3215_p7 }
0x11ab   : > { %p2732_p3 = pneg %p2731_p2 }
0x11ad   : > { %p2737_p5 = pnand %p2735_p4, %p2732_p3 }
0x11af   : > { %2740 = shalt.err (!%p2737_p5)
}
0x11b0   : > { %s2784_s29 = smov 4  }
0x11b1   : > { %2610 = dma.vmem_to_hbm [thread:$0]  (%p3215_p7), %s2158_s19, 128, %s3287_s20, [#allocation4], %s2772_s24, %s2772_s24, %s2784_s29  }
0x11b2   : > { %2754 = dma.done.wait (%p3215_p7), [#allocation4], 128  }
0x11b3   : > { %2756 = vsyncadd (%p3215_p7), [#allocation4], 4294967168 }
0x11b4 PF: > { %s3288_s5 = sld [smem:[#allocation7_spill]]  ;;  %s3289_s25 = sld [smem:[#allocation6_spill]] }
0x11b5   : > { %s3290_s26 = sld [smem:[#allocation8_spill]] }
0x11ba   : > { %s24_s27 = sadd.s32 1, %s3288_s5  }
0x11bb   : > { %p21_p6 = scmp.ge.s32.totalorder %s24_s27, 4  }
0x11bd   :  { %23 = sbr.rel (!%p21_p6) target bundleno = 6 (0x6), region = 144 }
0x11c4   :  { %2173 = vsyncpa [#allocation4], 1 }
0x11c5   :  { %2175 = vsyncpa [#allocation4 + $0x1], 1 }

</bundles_post_ra>
